<compile_context>
chip_gen: v6e
topology: v6e:2x2x1
jax: 0.10.0
libtpu: 0.0.40
codegen_flags: <defaults>
</compile_context>

<pallas_src>
import math
import jax
import jax.numpy as jnp
from jax import lax
from jax.experimental import pallas as pl
from jax.experimental.pallas import tpu as pltpu

# ---- model dims (small, synthetic) ----
B = 2          # batch
S = 8          # sequence length
H = 32         # hidden size
NH = 2         # attention heads
DH = H // NH   # head dim
FF = 64        # intermediate size
LAYERS = 2
VOCAB = 100
TYPES = 2
EPS = 1e-12
LANE = 128     # lane-dense width
BS = B * S

# ---- matrix slab (wm) row offsets: shape (WM_ROWS, LANE), bf16 ----
R_WBIG = 0                  # per layer l: rows [l*H, (l+1)*H) = [Wq*s | Wk | Wvo_h0 | Wvo_h1]
R_WI = LAYERS * H           # 64 : Wi for both layers packed along columns (H, LAYERS*FF)
R_WF = R_WI + H             # 96 : Wf for both layers packed along columns (FF, LAYERS*H)
R_WP = R_WF + FF            # 160: pooler Wp in cols [0, H)
WM_ROWS = R_WP + H          # 192

# ---- vector slab (wv) rows: shape (WV_ROWS_PAD, LANE), f32, data at lane 0 ----
RV_EMB_G, RV_EMB_B, RV_BP, RV_BL, RV_WLT = 0, 1, 2, 3, 4
RV_LAYER0 = 5
OV_BBIG, OV_BO, OV_G1, OV_B1, OV_BI, OV_BF, OV_G2, OV_B2 = range(8)
WV_ROWS = RV_LAYER0 + LAYERS * 8          # 21
WV_ROWS_PAD = 24                          # pad to sublane multiple


# ---------------- in-kernel helpers ----------------
def _layernorm(x, g, b):
    mu = jnp.mean(x, axis=-1, keepdims=True)
    var = jnp.mean((x - mu) ** 2, axis=-1, keepdims=True)
    return (x - mu) * lax.rsqrt(var + EPS) * g + b


def _gelu(x):
    # tanh approximation of GELU
    # TODO(synk): HF BERT default is the exact erf GELU; tanh approx differs ~1e-3.
    return 0.5 * x * (1.0 + jnp.tanh(0.7978845608028654 * (x + 0.044715 * x * x * x)))


# ---------------- fused forward kernel ----------------
def fused_forward_kernel(emb_ref, bias_ref, wm_ref, wv_ref, o_ref):
    def vrow(r, width):                                    # (1, width) f32 vector row
        return wv_ref[r:r + 1, 0:width]

    # Embedding LayerNorm over the flat (B*S, H) activation tile.
    x = _layernorm(emb_ref[...], vrow(RV_EMB_G, H), vrow(RV_EMB_B, H))
    bias = bias_ref[...]                                   # (BS, BS) additive attn bias

    for l in range(LAYERS):                                # static layer loop
        vb = RV_LAYER0 + l * 8

        # ---- one fused wide projection: [Q*scale | K | VO_h0 | VO_h1] ----
        w_big = wm_ref[R_WBIG + l * H:R_WBIG + (l + 1) * H, :]            # (H, 128) bf16
        proj = jnp.dot(x.astype(jnp.bfloat16), w_big,
                       preferred_element_type=jnp.float32) + vrow(vb + OV_BBIG, 4 * H)
        q = proj[:, 0:H]                                    # scale already folded
        k = proj[:, H:2 * H]

        # ---- attention over all BS rows at once (bias handles batches/padding) ----
        attn = jnp.zeros((BS, H), jnp.float32)
        for hh in range(NH):                                # static head loop
            qh = q[:, hh * DH:(hh + 1) * DH].astype(jnp.bfloat16)
            kh = k[:, hh * DH:(hh + 1) * DH].astype(jnp.bfloat16)
            s = lax.dot_general(qh, kh, (((1,), (1,)), ((), ())),
                                preferred_element_type=jnp.float32) + bias  # (BS, BS)
            s = s - jnp.max(s, axis=-1, keepdims=True)
            p = jnp.exp(s)
            p = p * pl.reciprocal(jnp.sum(p, axis=-1, keepdims=True), approx=True)
            vo = proj[:, (2 + hh) * H:(3 + hh) * H]          # (BS, H), Wv@Wo folded + bias
            attn = attn + jnp.dot(p.astype(jnp.bfloat16), vo.astype(jnp.bfloat16),
                                  preferred_element_type=jnp.float32)
        attn = attn + vrow(vb + OV_BO, H)

        h1 = _layernorm(x + attn, vrow(vb + OV_G1, H), vrow(vb + OV_B1, H))

        # ---- feed-forward ----
        wi = wm_ref[R_WI:R_WI + H, l * FF:(l + 1) * FF]     # (H, FF) bf16
        wf = wm_ref[R_WF:R_WF + FF, l * H:(l + 1) * H]      # (FF, H) bf16
        ff = _gelu(jnp.dot(h1.astype(jnp.bfloat16), wi,
                           preferred_element_type=jnp.float32) + vrow(vb + OV_BI, FF))
        y = jnp.dot(ff.astype(jnp.bfloat16), wf,
                    preferred_element_type=jnp.float32) + vrow(vb + OV_BF, H)
        x = _layernorm(h1 + y, vrow(vb + OV_G2, H), vrow(vb + OV_B2, H))

    # ---- pooler (tanh) + Linear(H->1) + sigmoid ----
    col = lax.broadcasted_iota(jnp.int32, (B, BS), 1)
    row = lax.broadcasted_iota(jnp.int32, (B, BS), 0)
    sel = (col == row * S).astype(jnp.bfloat16)             # one-hot CLS row selector
    cls = jnp.dot(sel, x.astype(jnp.bfloat16), preferred_element_type=jnp.float32)  # (B, H)

    wp = wm_ref[R_WP:R_WP + H, 0:H]                          # (H, H) bf16
    pooled = jnp.tanh(jnp.dot(cls.astype(jnp.bfloat16), wp,
                              preferred_element_type=jnp.float32) + vrow(RV_BP, H))
    # classifier: dot with wl^T stored as a lane-dense row -> reduce over lanes
    logits = jnp.sum(pooled * vrow(RV_WLT, H), axis=-1, keepdims=True) + vrow(RV_BL, 1)
    score = 1.0 / (1.0 + jnp.exp(-logits))                   # exact sigmoid (B, 1)
    o_ref[...] = jnp.broadcast_to(score, (B, LANE))          # lane-dense store


# ---------------- pallas_call wrapper ----------------
def fused_forward(emb_flat, attn_bias, wm, wv):
    args = (emb_flat, attn_bias, wm, wv)
    out = pl.pallas_call(
        fused_forward_kernel,
        out_shape=jax.ShapeDtypeStruct((B, LANE), jnp.float32),
        grid=(1,),
        in_specs=[pl.BlockSpec(a.shape, lambda i, nd=a.ndim: (0,) * nd) for a in args],
        out_specs=pl.BlockSpec((B, LANE), lambda i: (0, 0)),
        compiler_params=pltpu.CompilerParams(dimension_semantics=("arbitrary",)),
    )(*args)
    return out[:, 0]


# ---------------- parameter init (deterministic, synthetic) ----------------
def init_params(key):
    ks = iter(jax.random.split(key, 8 + LAYERS * 8))
    nrm = lambda k, shp: (0.02 * jax.random.normal(k, shp)).astype(jnp.float32)

    params = {
        "word_emb": nrm(next(ks), (VOCAB, H)),
        "pos_emb": nrm(next(ks), (S, H)),
        "type_emb": nrm(next(ks), (TYPES, H)),
        "emb_g": jnp.ones((1, H), jnp.float32),
        "emb_b": jnp.zeros((1, H), jnp.float32),
        "wp": nrm(next(ks), (H, H)), "bp": jnp.zeros((1, H), jnp.float32),
        "wl": nrm(next(ks), (H, 1)), "bl": jnp.zeros((1, 1), jnp.float32),
        "layers": [],
    }
    for _ in range(LAYERS):
        lp = {
            "wq": nrm(next(ks), (H, H)), "bq": jnp.zeros((1, H), jnp.float32),
            "wk": nrm(next(ks), (H, H)), "bk": jnp.zeros((1, H), jnp.float32),
            "wv": nrm(next(ks), (H, H)), "bv": jnp.zeros((1, H), jnp.float32),
            "wo": nrm(next(ks), (H, H)), "bo": jnp.zeros((1, H), jnp.float32),
            "g1": jnp.ones((1, H), jnp.float32), "b1": jnp.zeros((1, H), jnp.float32),
            "wi": nrm(next(ks), (H, FF)), "bi": jnp.zeros((1, FF), jnp.float32),
            "wf": nrm(next(ks), (FF, H)), "bf": jnp.zeros((1, H), jnp.float32),
            "g2": jnp.ones((1, H), jnp.float32), "b2": jnp.zeros((1, H), jnp.float32),
        }
        params["layers"].append(lp)
    return params


def pack_params(p):
    """One-time repack: fold 1/sqrt(DH) into Wq/bq, fold Wv@Wo / bv@Wo per head,
    and pack everything into ONE bf16 matrix slab + ONE f32 vector slab."""
    scale = 1.0 / math.sqrt(DH)
    L = p["layers"]

    # ---- matrix slab (bf16) ----
    wbig = []
    for lp in L:
        wvo = [lp["wv"][:, h * DH:(h + 1) * DH] @ lp["wo"][h * DH:(h + 1) * DH, :]
               for h in range(NH)]
        wbig.append(jnp.concatenate([lp["wq"] * scale, lp["wk"]] + wvo, axis=1))   # (H, 4H)
    wbig = jnp.concatenate(wbig, axis=0)                                            # (L*H, 128)

    wi = jnp.concatenate([lp["wi"] for lp in L], axis=1)                            # (H, L*FF)

    wf = jnp.zeros((FF, LANE), jnp.float32)
    wf = wf.at[:, :LAYERS * H].set(jnp.concatenate([lp["wf"] for lp in L], axis=1))

    wpool = jnp.zeros((H, LANE), jnp.float32)
    wpool = wpool.at[:, :H].set(p["wp"])

    wm = jnp.concatenate([wbig, wi, wf, wpool], axis=0).astype(jnp.bfloat16)        # (192, 128)
    assert wm.shape == (WM_ROWS, LANE)

    # ---- vector slab (f32), each vector on its own row at lane offset 0 ----
    def row(v):
        r = jnp.zeros((1, LANE), jnp.float32)
        return r.at[:, :v.shape[-1]].set(v.reshape(1, -1))

    rows = [row(p["emb_g"]), row(p["emb_b"]), row(p["bp"]), row(p["bl"]),
            row(p["wl"].reshape(1, H))]                      # wl stored transposed (1, H)
    for lp in L:
        bvo = [lp["bv"][:, h * DH:(h + 1) * DH] @ lp["wo"][h * DH:(h + 1) * DH, :]
               for h in range(NH)]
        bbig = jnp.concatenate([lp["bq"] * scale, lp["bk"]] + bvo, axis=1)          # (1, 128)
        rows += [row(bbig), row(lp["bo"]), row(lp["g1"]), row(lp["b1"]),
                 row(lp["bi"]), row(lp["bf"]), row(lp["g2"]), row(lp["b2"])]
    wv = jnp.concatenate(rows, axis=0)
    wv = jnp.concatenate(
        [wv, jnp.zeros((WV_ROWS_PAD - wv.shape[0], LANE), jnp.float32)], axis=0)    # (24, 128)

    return {"word_emb": p["word_emb"], "pos_emb": p["pos_emb"], "type_emb": p["type_emb"],
            "wm": wm, "wv": wv}


# ---------------- LongModel.forward ----------------
def long_model_forward(packed, input_ids, attention_mask, token_type_ids, label=None):
    B_, S_ = input_ids.shape
    pos = jnp.arange(S_)
    # Embedding-table gathers stay in plain JAX glue.
    emb = (jnp.take(packed["word_emb"], input_ids, axis=0)
           + jnp.take(packed["pos_emb"], pos, axis=0)[None, :, :]
           + jnp.take(packed["type_emb"], token_type_ids, axis=0))
    emb_flat = emb.reshape(B_ * S_, H).astype(jnp.float32)

    # Block-diagonal (B*S, B*S) additive attention bias: -1e9 for cross-batch
    # positions and padded keys, 0 otherwise.
    key_mask = attention_mask.reshape(-1).astype(jnp.float32)
    batch_ids = jnp.repeat(jnp.arange(B_), S_)
    valid = (batch_ids[:, None] == batch_ids[None, :]) & (key_mask[None, :] > 0)
    attn_bias = jnp.where(valid, 0.0, -1e9).astype(jnp.float32)

    score = fused_forward(emb_flat, attn_bias, packed["wm"], packed["wv"])
    return score, label        # torch.sigmoid(logits).squeeze(-1), label


if __name__ == "__main__":
    key = jax.random.PRNGKey(0)
    k_par, k_ids, k_typ = jax.random.split(key, 3)

    params = init_params(k_par)
    packed = pack_params(params)

    input_ids = jax.random.randint(k_ids, (B, S), 0, VOCAB, dtype=jnp.int32)
    token_type_ids = jax.random.randint(k_typ, (B, S), 0, TYPES, dtype=jnp.int32)
    attention_mask = jnp.ones((B, S), jnp.int32).at[1, S - 2:].set(0)  # some padding
    label = jnp.array([1.0, 0.0], jnp.float32)

    fwd = jax.jit(long_model_forward)
    score, lab = fwd(packed, input_ids, attention_mask, token_type_ids, label)
    score = jax.block_until_ready(score)
    assert score.shape == (B,)
    assert bool(jnp.all(jnp.isfinite(score)))
    print("KERNEL_OK")
</pallas_src>

<mosaic_0001>
module attributes {stable_mosaic.version = 11 : i64} {
  func.func @fused_forward_kernel(%arg0: i32, %arg1: memref<16x32xf32, #tpu.memory_space<vmem>>, %arg2: memref<16x16xf32, #tpu.memory_space<vmem>>, %arg3: memref<192x128xbf16, #tpu.memory_space<vmem>>, %arg4: memref<24x128xf32, #tpu.memory_space<vmem>>, %arg5: memref<2x128xf32, #tpu.memory_space<vmem>>) attributes {dimension_semantics = [#tpu.dimension_semantics<arbitrary>], iteration_bounds = array<i64: 1>, scalar_prefetch = 0 : i64, scratch_operands = 0 : i64, tpu.core_type = #tpu.core_type<tc>, window_params = [{pipeline_mode = #tpu.pipeline_mode<synchronous>, transform_indices = @transform_0, window_bounds = array<i64: 16, 32>}, {pipeline_mode = #tpu.pipeline_mode<synchronous>, transform_indices = @transform_1, window_bounds = array<i64: 16, 16>}, {pipeline_mode = #tpu.pipeline_mode<synchronous>, transform_indices = @transform_2, window_bounds = array<i64: 192, 128>}, {pipeline_mode = #tpu.pipeline_mode<synchronous>, transform_indices = @transform_3, window_bounds = array<i64: 24, 128>}, {pipeline_mode = #tpu.pipeline_mode<synchronous>, transform_indices = @transform_4, window_bounds = array<i64: 2, 128>}]} {
    %c0 = arith.constant 0 : index
    %c0_0 = arith.constant 0 : index
    %0 = vector.load %arg1[%c0, %c0_0] : memref<16x32xf32, #tpu.memory_space<vmem>>, vector<16x32xf32>
    %c0_1 = arith.constant 0 : index
    %c0_2 = arith.constant 0 : index
    %1 = vector.load %arg4[%c0_1, %c0_2] : memref<24x128xf32, #tpu.memory_space<vmem>>, vector<1x32xf32>
    %c1 = arith.constant 1 : index
    %c0_3 = arith.constant 0 : index
    %2 = vector.load %arg4[%c1, %c0_3] : memref<24x128xf32, #tpu.memory_space<vmem>>, vector<1x32xf32>
    %cst = arith.constant dense<0.000000e+00> : vector<16xf32>
    %3 = vector.multi_reduction <add>, %0, %cst [1] : vector<16x32xf32> to vector<16xf32>
    %4 = vector.shape_cast %3 : vector<16xf32> to vector<16x1xf32>
    %cst_4 = arith.constant 3.200000e+01 : f32
    %5 = vector.broadcast %cst_4 : f32 to vector<16x1xf32>
    %6 = arith.divf %4, %5 : vector<16x1xf32>
    %7 = vector.broadcast %6 : vector<16x1xf32> to vector<16x32xf32>
    %8 = arith.subf %0, %7 : vector<16x32xf32>
    %9 = arith.mulf %8, %8 : vector<16x32xf32>
    %cst_5 = arith.constant dense<0.000000e+00> : vector<16xf32>
    %10 = vector.multi_reduction <add>, %9, %cst_5 [1] : vector<16x32xf32> to vector<16xf32>
    %11 = vector.shape_cast %10 : vector<16xf32> to vector<16x1xf32>
    %cst_6 = arith.constant 3.200000e+01 : f32
    %12 = vector.broadcast %cst_6 : f32 to vector<16x1xf32>
    %13 = arith.divf %11, %12 : vector<16x1xf32>
    %14 = vector.broadcast %6 : vector<16x1xf32> to vector<16x32xf32>
    %15 = arith.subf %0, %14 : vector<16x32xf32>
    %cst_7 = arith.constant 9.99999996E-13 : f32
    %16 = vector.broadcast %cst_7 : f32 to vector<16x1xf32>
    %17 = arith.addf %13, %16 : vector<16x1xf32>
    %18 = math.rsqrt %17 : vector<16x1xf32>
    %19 = vector.broadcast %18 : vector<16x1xf32> to vector<16x32xf32>
    %20 = arith.mulf %15, %19 : vector<16x32xf32>
    %21 = vector.broadcast %1 : vector<1x32xf32> to vector<16x32xf32>
    %22 = arith.mulf %20, %21 : vector<16x32xf32>
    %23 = vector.broadcast %2 : vector<1x32xf32> to vector<16x32xf32>
    %24 = arith.addf %22, %23 : vector<16x32xf32>
    %c0_8 = arith.constant 0 : index
    %c0_9 = arith.constant 0 : index
    %25 = vector.load %arg2[%c0_8, %c0_9] : memref<16x16xf32, #tpu.memory_space<vmem>>, vector<16x16xf32>
    %c0_10 = arith.constant 0 : index
    %c0_11 = arith.constant 0 : index
    %26 = vector.load %arg3[%c0_10, %c0_11] : memref<192x128xbf16, #tpu.memory_space<vmem>>, vector<32x128xbf16>
    %27 = arith.truncf %24 : vector<16x32xf32> to vector<16x32xbf16>
    %cst_12 = arith.constant dense<0.000000e+00> : vector<16x128xf32>
    %28 = tpu.matmul %27, %26, %cst_12 {dimension_numbers = #tpu.dot_dimension_numbers<[1], [0], [0], [1], [0, 0, 1, 1], [], []>} : vector<16x32xbf16>, vector<32x128xbf16>, vector<16x128xf32> -> vector<16x128xf32>
    %c5 = arith.constant 5 : index
    %c0_13 = arith.constant 0 : index
    %29 = vector.load %arg4[%c5, %c0_13] : memref<24x128xf32, #tpu.memory_space<vmem>>, vector<1x128xf32>
    %30 = vector.broadcast %29 : vector<1x128xf32> to vector<16x128xf32>
    %31 = arith.addf %28, %30 : vector<16x128xf32>
    %32 = vector.extract_strided_slice %31 {offsets = [0, 0], sizes = [16, 32], strides = [1, 1]} : vector<16x128xf32> to vector<16x32xf32>
    %33 = vector.extract_strided_slice %31 {offsets = [0, 32], sizes = [16, 32], strides = [1, 1]} : vector<16x128xf32> to vector<16x32xf32>
    %cst_14 = arith.constant 0.000000e+00 : f32
    %34 = vector.broadcast %cst_14 : f32 to vector<16x32xf32>
    %35 = vector.extract_strided_slice %32 {offsets = [0, 0], sizes = [16, 16], strides = [1, 1]} : vector<16x32xf32> to vector<16x16xf32>
    %36 = arith.truncf %35 : vector<16x16xf32> to vector<16x16xbf16>
    %37 = vector.extract_strided_slice %33 {offsets = [0, 0], sizes = [16, 16], strides = [1, 1]} : vector<16x32xf32> to vector<16x16xf32>
    %38 = arith.truncf %37 : vector<16x16xf32> to vector<16x16xbf16>
    %cst_15 = arith.constant dense<0.000000e+00> : vector<16x16xf32>
    %39 = tpu.matmul %36, %38, %cst_15 {dimension_numbers = #tpu.dot_dimension_numbers<[1], [1], [0], [0], [0, 0, 1, 0], [], []>} : vector<16x16xbf16>, vector<16x16xbf16>, vector<16x16xf32> -> vector<16x16xf32>
    %40 = arith.addf %39, %25 : vector<16x16xf32>
    %cst_16 = arith.constant dense<0xFF800000> : vector<16xf32>
    %41 = vector.multi_reduction <maximumf>, %40, %cst_16 [1] : vector<16x16xf32> to vector<16xf32>
    %42 = vector.shape_cast %41 : vector<16xf32> to vector<16x1xf32>
    %43 = vector.broadcast %42 : vector<16x1xf32> to vector<16x16xf32>
    %44 = arith.subf %40, %43 : vector<16x16xf32>
    %45 = math.exp %44 : vector<16x16xf32>
    %cst_17 = arith.constant dense<0.000000e+00> : vector<16xf32>
    %46 = vector.multi_reduction <add>, %45, %cst_17 [1] : vector<16x16xf32> to vector<16xf32>
    %47 = vector.shape_cast %46 : vector<16xf32> to vector<16x1xf32>
    %48 = tpu.reciprocal %47 {approx = true} : vector<16x1xf32> -> vector<16x1xf32>
    %49 = vector.broadcast %48 : vector<16x1xf32> to vector<16x16xf32>
    %50 = arith.mulf %45, %49 : vector<16x16xf32>
    %51 = vector.extract_strided_slice %31 {offsets = [0, 64], sizes = [16, 32], strides = [1, 1]} : vector<16x128xf32> to vector<16x32xf32>
    %52 = arith.truncf %50 : vector<16x16xf32> to vector<16x16xbf16>
    %53 = arith.truncf %51 : vector<16x32xf32> to vector<16x32xbf16>
    %cst_18 = arith.constant dense<0.000000e+00> : vector<16x32xf32>
    %54 = tpu.matmul %52, %53, %cst_18 {dimension_numbers = #tpu.dot_dimension_numbers<[1], [0], [0], [1], [0, 0, 1, 1], [], []>} : vector<16x16xbf16>, vector<16x32xbf16>, vector<16x32xf32> -> vector<16x32xf32>
    %55 = arith.addf %34, %54 : vector<16x32xf32>
    %56 = vector.extract_strided_slice %32 {offsets = [0, 16], sizes = [16, 16], strides = [1, 1]} : vector<16x32xf32> to vector<16x16xf32>
    %57 = arith.truncf %56 : vector<16x16xf32> to vector<16x16xbf16>
    %58 = vector.extract_strided_slice %33 {offsets = [0, 16], sizes = [16, 16], strides = [1, 1]} : vector<16x32xf32> to vector<16x16xf32>
    %59 = arith.truncf %58 : vector<16x16xf32> to vector<16x16xbf16>
    %cst_19 = arith.constant dense<0.000000e+00> : vector<16x16xf32>
    %60 = tpu.matmul %57, %59, %cst_19 {dimension_numbers = #tpu.dot_dimension_numbers<[1], [1], [0], [0], [0, 0, 1, 0], [], []>} : vector<16x16xbf16>, vector<16x16xbf16>, vector<16x16xf32> -> vector<16x16xf32>
    %61 = arith.addf %60, %25 : vector<16x16xf32>
    %cst_20 = arith.constant dense<0xFF800000> : vector<16xf32>
    %62 = vector.multi_reduction <maximumf>, %61, %cst_20 [1] : vector<16x16xf32> to vector<16xf32>
    %63 = vector.shape_cast %62 : vector<16xf32> to vector<16x1xf32>
    %64 = vector.broadcast %63 : vector<16x1xf32> to vector<16x16xf32>
    %65 = arith.subf %61, %64 : vector<16x16xf32>
    %66 = math.exp %65 : vector<16x16xf32>
    %cst_21 = arith.constant dense<0.000000e+00> : vector<16xf32>
    %67 = vector.multi_reduction <add>, %66, %cst_21 [1] : vector<16x16xf32> to vector<16xf32>
    %68 = vector.shape_cast %67 : vector<16xf32> to vector<16x1xf32>
    %69 = tpu.reciprocal %68 {approx = true} : vector<16x1xf32> -> vector<16x1xf32>
    %70 = vector.broadcast %69 : vector<16x1xf32> to vector<16x16xf32>
    %71 = arith.mulf %66, %70 : vector<16x16xf32>
    %72 = vector.extract_strided_slice %31 {offsets = [0, 96], sizes = [16, 32], strides = [1, 1]} : vector<16x128xf32> to vector<16x32xf32>
    %73 = arith.truncf %71 : vector<16x16xf32> to vector<16x16xbf16>
    %74 = arith.truncf %72 : vector<16x32xf32> to vector<16x32xbf16>
    %cst_22 = arith.constant dense<0.000000e+00> : vector<16x32xf32>
    %75 = tpu.matmul %73, %74, %cst_22 {dimension_numbers = #tpu.dot_dimension_numbers<[1], [0], [0], [1], [0, 0, 1, 1], [], []>} : vector<16x16xbf16>, vector<16x32xbf16>, vector<16x32xf32> -> vector<16x32xf32>
    %76 = arith.addf %55, %75 : vector<16x32xf32>
    %c6 = arith.constant 6 : index
    %c0_23 = arith.constant 0 : index
    %77 = vector.load %arg4[%c6, %c0_23] : memref<24x128xf32, #tpu.memory_space<vmem>>, vector<1x32xf32>
    %78 = vector.broadcast %77 : vector<1x32xf32> to vector<16x32xf32>
    %79 = arith.addf %76, %78 : vector<16x32xf32>
    %80 = arith.addf %24, %79 : vector<16x32xf32>
    %c7 = arith.constant 7 : index
    %c0_24 = arith.constant 0 : index
    %81 = vector.load %arg4[%c7, %c0_24] : memref<24x128xf32, #tpu.memory_space<vmem>>, vector<1x32xf32>
    %c8 = arith.constant 8 : index
    %c0_25 = arith.constant 0 : index
    %82 = vector.load %arg4[%c8, %c0_25] : memref<24x128xf32, #tpu.memory_space<vmem>>, vector<1x32xf32>
    %cst_26 = arith.constant dense<0.000000e+00> : vector<16xf32>
    %83 = vector.multi_reduction <add>, %80, %cst_26 [1] : vector<16x32xf32> to vector<16xf32>
    %84 = vector.shape_cast %83 : vector<16xf32> to vector<16x1xf32>
    %cst_27 = arith.constant 3.200000e+01 : f32
    %85 = vector.broadcast %cst_27 : f32 to vector<16x1xf32>
    %86 = arith.divf %84, %85 : vector<16x1xf32>
    %87 = vector.broadcast %86 : vector<16x1xf32> to vector<16x32xf32>
    %88 = arith.subf %80, %87 : vector<16x32xf32>
    %89 = arith.mulf %88, %88 : vector<16x32xf32>
    %cst_28 = arith.constant dense<0.000000e+00> : vector<16xf32>
    %90 = vector.multi_reduction <add>, %89, %cst_28 [1] : vector<16x32xf32> to vector<16xf32>
    %91 = vector.shape_cast %90 : vector<16xf32> to vector<16x1xf32>
    %cst_29 = arith.constant 3.200000e+01 : f32
    %92 = vector.broadcast %cst_29 : f32 to vector<16x1xf32>
    %93 = arith.divf %91, %92 : vector<16x1xf32>
    %94 = vector.broadcast %86 : vector<16x1xf32> to vector<16x32xf32>
    %95 = arith.subf %80, %94 : vector<16x32xf32>
    %cst_30 = arith.constant 9.99999996E-13 : f32
    %96 = vector.broadcast %cst_30 : f32 to vector<16x1xf32>
    %97 = arith.addf %93, %96 : vector<16x1xf32>
    %98 = math.rsqrt %97 : vector<16x1xf32>
    %99 = vector.broadcast %98 : vector<16x1xf32> to vector<16x32xf32>
    %100 = arith.mulf %95, %99 : vector<16x32xf32>
    %101 = vector.broadcast %81 : vector<1x32xf32> to vector<16x32xf32>
    %102 = arith.mulf %100, %101 : vector<16x32xf32>
    %103 = vector.broadcast %82 : vector<1x32xf32> to vector<16x32xf32>
    %104 = arith.addf %102, %103 : vector<16x32xf32>
    %c64 = arith.constant 64 : index
    %c0_31 = arith.constant 0 : index
    %105 = vector.load %arg3[%c64, %c0_31] : memref<192x128xbf16, #tpu.memory_space<vmem>>, vector<32x64xbf16>
    %c96 = arith.constant 96 : index
    %c0_32 = arith.constant 0 : index
    %106 = vector.load %arg3[%c96, %c0_32] : memref<192x128xbf16, #tpu.memory_space<vmem>>, vector<64x32xbf16>
    %107 = arith.truncf %104 : vector<16x32xf32> to vector<16x32xbf16>
    %cst_33 = arith.constant dense<0.000000e+00> : vector<16x64xf32>
    %108 = tpu.matmul %107, %105, %cst_33 {dimension_numbers = #tpu.dot_dimension_numbers<[1], [0], [0], [1], [0, 0, 1, 1], [], []>} : vector<16x32xbf16>, vector<32x64xbf16>, vector<16x64xf32> -> vector<16x64xf32>
    %c9 = arith.constant 9 : index
    %c0_34 = arith.constant 0 : index
    %109 = vector.load %arg4[%c9, %c0_34] : memref<24x128xf32, #tpu.memory_space<vmem>>, vector<1x64xf32>
    %110 = vector.broadcast %109 : vector<1x64xf32> to vector<16x64xf32>
    %111 = arith.addf %108, %110 : vector<16x64xf32>
    %cst_35 = arith.constant 5.000000e-01 : f32
    %112 = vector.broadcast %cst_35 : f32 to vector<16x64xf32>
    %113 = arith.mulf %112, %111 : vector<16x64xf32>
    %cst_36 = arith.constant 4.471500e-02 : f32
    %114 = vector.broadcast %cst_36 : f32 to vector<16x64xf32>
    %115 = arith.mulf %114, %111 : vector<16x64xf32>
    %116 = arith.mulf %115, %111 : vector<16x64xf32>
    %117 = arith.mulf %116, %111 : vector<16x64xf32>
    %118 = arith.addf %111, %117 : vector<16x64xf32>
    %cst_37 = arith.constant 0.797884583 : f32
    %119 = vector.broadcast %cst_37 : f32 to vector<16x64xf32>
    %120 = arith.mulf %119, %118 : vector<16x64xf32>
    %121 = math.tanh %120 : vector<16x64xf32>
    %cst_38 = arith.constant 1.000000e+00 : f32
    %122 = vector.broadcast %cst_38 : f32 to vector<16x64xf32>
    %123 = arith.addf %122, %121 : vector<16x64xf32>
    %124 = arith.mulf %113, %123 : vector<16x64xf32>
    %125 = arith.truncf %124 : vector<16x64xf32> to vector<16x64xbf16>
    %cst_39 = arith.constant dense<0.000000e+00> : vector<16x32xf32>
    %126 = tpu.matmul %125, %106, %cst_39 {dimension_numbers = #tpu.dot_dimension_numbers<[1], [0], [0], [1], [0, 0, 1, 1], [], []>} : vector<16x64xbf16>, vector<64x32xbf16>, vector<16x32xf32> -> vector<16x32xf32>
    %c10 = arith.constant 10 : index
    %c0_40 = arith.constant 0 : index
    %127 = vector.load %arg4[%c10, %c0_40] : memref<24x128xf32, #tpu.memory_space<vmem>>, vector<1x32xf32>
    %128 = vector.broadcast %127 : vector<1x32xf32> to vector<16x32xf32>
    %129 = arith.addf %126, %128 : vector<16x32xf32>
    %130 = arith.addf %104, %129 : vector<16x32xf32>
    %c11 = arith.constant 11 : index
    %c0_41 = arith.constant 0 : index
    %131 = vector.load %arg4[%c11, %c0_41] : memref<24x128xf32, #tpu.memory_space<vmem>>, vector<1x32xf32>
    %c12 = arith.constant 12 : index
    %c0_42 = arith.constant 0 : index
    %132 = vector.load %arg4[%c12, %c0_42] : memref<24x128xf32, #tpu.memory_space<vmem>>, vector<1x32xf32>
    %cst_43 = arith.constant dense<0.000000e+00> : vector<16xf32>
    %133 = vector.multi_reduction <add>, %130, %cst_43 [1] : vector<16x32xf32> to vector<16xf32>
    %134 = vector.shape_cast %133 : vector<16xf32> to vector<16x1xf32>
    %cst_44 = arith.constant 3.200000e+01 : f32
    %135 = vector.broadcast %cst_44 : f32 to vector<16x1xf32>
    %136 = arith.divf %134, %135 : vector<16x1xf32>
    %137 = vector.broadcast %136 : vector<16x1xf32> to vector<16x32xf32>
    %138 = arith.subf %130, %137 : vector<16x32xf32>
    %139 = arith.mulf %138, %138 : vector<16x32xf32>
    %cst_45 = arith.constant dense<0.000000e+00> : vector<16xf32>
    %140 = vector.multi_reduction <add>, %139, %cst_45 [1] : vector<16x32xf32> to vector<16xf32>
    %141 = vector.shape_cast %140 : vector<16xf32> to vector<16x1xf32>
    %cst_46 = arith.constant 3.200000e+01 : f32
    %142 = vector.broadcast %cst_46 : f32 to vector<16x1xf32>
    %143 = arith.divf %141, %142 : vector<16x1xf32>
    %144 = vector.broadcast %136 : vector<16x1xf32> to vector<16x32xf32>
    %145 = arith.subf %130, %144 : vector<16x32xf32>
    %cst_47 = arith.constant 9.99999996E-13 : f32
    %146 = vector.broadcast %cst_47 : f32 to vector<16x1xf32>
    %147 = arith.addf %143, %146 : vector<16x1xf32>
    %148 = math.rsqrt %147 : vector<16x1xf32>
    %149 = vector.broadcast %148 : vector<16x1xf32> to vector<16x32xf32>
    %150 = arith.mulf %145, %149 : vector<16x32xf32>
    %151 = vector.broadcast %131 : vector<1x32xf32> to vector<16x32xf32>
    %152 = arith.mulf %150, %151 : vector<16x32xf32>
    %153 = vector.broadcast %132 : vector<1x32xf32> to vector<16x32xf32>
    %154 = arith.addf %152, %153 : vector<16x32xf32>
    %c32 = arith.constant 32 : index
    %c0_48 = arith.constant 0 : index
    %155 = vector.load %arg3[%c32, %c0_48] : memref<192x128xbf16, #tpu.memory_space<vmem>>, vector<32x128xbf16>
    %156 = arith.truncf %154 : vector<16x32xf32> to vector<16x32xbf16>
    %cst_49 = arith.constant dense<0.000000e+00> : vector<16x128xf32>
    %157 = tpu.matmul %156, %155, %cst_49 {dimension_numbers = #tpu.dot_dimension_numbers<[1], [0], [0], [1], [0, 0, 1, 1], [], []>} : vector<16x32xbf16>, vector<32x128xbf16>, vector<16x128xf32> -> vector<16x128xf32>
    %c13 = arith.constant 13 : index
    %c0_50 = arith.constant 0 : index
    %158 = vector.load %arg4[%c13, %c0_50] : memref<24x128xf32, #tpu.memory_space<vmem>>, vector<1x128xf32>
    %159 = vector.broadcast %158 : vector<1x128xf32> to vector<16x128xf32>
    %160 = arith.addf %157, %159 : vector<16x128xf32>
    %161 = vector.extract_strided_slice %160 {offsets = [0, 0], sizes = [16, 32], strides = [1, 1]} : vector<16x128xf32> to vector<16x32xf32>
    %162 = vector.extract_strided_slice %160 {offsets = [0, 32], sizes = [16, 32], strides = [1, 1]} : vector<16x128xf32> to vector<16x32xf32>
    %cst_51 = arith.constant 0.000000e+00 : f32
    %163 = vector.broadcast %cst_51 : f32 to vector<16x32xf32>
    %164 = vector.extract_strided_slice %161 {offsets = [0, 0], sizes = [16, 16], strides = [1, 1]} : vector<16x32xf32> to vector<16x16xf32>
    %165 = arith.truncf %164 : vector<16x16xf32> to vector<16x16xbf16>
    %166 = vector.extract_strided_slice %162 {offsets = [0, 0], sizes = [16, 16], strides = [1, 1]} : vector<16x32xf32> to vector<16x16xf32>
    %167 = arith.truncf %166 : vector<16x16xf32> to vector<16x16xbf16>
    %cst_52 = arith.constant dense<0.000000e+00> : vector<16x16xf32>
    %168 = tpu.matmul %165, %167, %cst_52 {dimension_numbers = #tpu.dot_dimension_numbers<[1], [1], [0], [0], [0, 0, 1, 0], [], []>} : vector<16x16xbf16>, vector<16x16xbf16>, vector<16x16xf32> -> vector<16x16xf32>
    %169 = arith.addf %168, %25 : vector<16x16xf32>
    %cst_53 = arith.constant dense<0xFF800000> : vector<16xf32>
    %170 = vector.multi_reduction <maximumf>, %169, %cst_53 [1] : vector<16x16xf32> to vector<16xf32>
    %171 = vector.shape_cast %170 : vector<16xf32> to vector<16x1xf32>
    %172 = vector.broadcast %171 : vector<16x1xf32> to vector<16x16xf32>
    %173 = arith.subf %169, %172 : vector<16x16xf32>
    %174 = math.exp %173 : vector<16x16xf32>
    %cst_54 = arith.constant dense<0.000000e+00> : vector<16xf32>
    %175 = vector.multi_reduction <add>, %174, %cst_54 [1] : vector<16x16xf32> to vector<16xf32>
    %176 = vector.shape_cast %175 : vector<16xf32> to vector<16x1xf32>
    %177 = tpu.reciprocal %176 {approx = true} : vector<16x1xf32> -> vector<16x1xf32>
    %178 = vector.broadcast %177 : vector<16x1xf32> to vector<16x16xf32>
    %179 = arith.mulf %174, %178 : vector<16x16xf32>
    %180 = vector.extract_strided_slice %160 {offsets = [0, 64], sizes = [16, 32], strides = [1, 1]} : vector<16x128xf32> to vector<16x32xf32>
    %181 = arith.truncf %179 : vector<16x16xf32> to vector<16x16xbf16>
    %182 = arith.truncf %180 : vector<16x32xf32> to vector<16x32xbf16>
    %cst_55 = arith.constant dense<0.000000e+00> : vector<16x32xf32>
    %183 = tpu.matmul %181, %182, %cst_55 {dimension_numbers = #tpu.dot_dimension_numbers<[1], [0], [0], [1], [0, 0, 1, 1], [], []>} : vector<16x16xbf16>, vector<16x32xbf16>, vector<16x32xf32> -> vector<16x32xf32>
    %184 = arith.addf %163, %183 : vector<16x32xf32>
    %185 = vector.extract_strided_slice %161 {offsets = [0, 16], sizes = [16, 16], strides = [1, 1]} : vector<16x32xf32> to vector<16x16xf32>
    %186 = arith.truncf %185 : vector<16x16xf32> to vector<16x16xbf16>
    %187 = vector.extract_strided_slice %162 {offsets = [0, 16], sizes = [16, 16], strides = [1, 1]} : vector<16x32xf32> to vector<16x16xf32>
    %188 = arith.truncf %187 : vector<16x16xf32> to vector<16x16xbf16>
    %cst_56 = arith.constant dense<0.000000e+00> : vector<16x16xf32>
    %189 = tpu.matmul %186, %188, %cst_56 {dimension_numbers = #tpu.dot_dimension_numbers<[1], [1], [0], [0], [0, 0, 1, 0], [], []>} : vector<16x16xbf16>, vector<16x16xbf16>, vector<16x16xf32> -> vector<16x16xf32>
    %190 = arith.addf %189, %25 : vector<16x16xf32>
    %cst_57 = arith.constant dense<0xFF800000> : vector<16xf32>
    %191 = vector.multi_reduction <maximumf>, %190, %cst_57 [1] : vector<16x16xf32> to vector<16xf32>
    %192 = vector.shape_cast %191 : vector<16xf32> to vector<16x1xf32>
    %193 = vector.broadcast %192 : vector<16x1xf32> to vector<16x16xf32>
    %194 = arith.subf %190, %193 : vector<16x16xf32>
    %195 = math.exp %194 : vector<16x16xf32>
    %cst_58 = arith.constant dense<0.000000e+00> : vector<16xf32>
    %196 = vector.multi_reduction <add>, %195, %cst_58 [1] : vector<16x16xf32> to vector<16xf32>
    %197 = vector.shape_cast %196 : vector<16xf32> to vector<16x1xf32>
    %198 = tpu.reciprocal %197 {approx = true} : vector<16x1xf32> -> vector<16x1xf32>
    %199 = vector.broadcast %198 : vector<16x1xf32> to vector<16x16xf32>
    %200 = arith.mulf %195, %199 : vector<16x16xf32>
    %201 = vector.extract_strided_slice %160 {offsets = [0, 96], sizes = [16, 32], strides = [1, 1]} : vector<16x128xf32> to vector<16x32xf32>
    %202 = arith.truncf %200 : vector<16x16xf32> to vector<16x16xbf16>
    %203 = arith.truncf %201 : vector<16x32xf32> to vector<16x32xbf16>
    %cst_59 = arith.constant dense<0.000000e+00> : vector<16x32xf32>
    %204 = tpu.matmul %202, %203, %cst_59 {dimension_numbers = #tpu.dot_dimension_numbers<[1], [0], [0], [1], [0, 0, 1, 1], [], []>} : vector<16x16xbf16>, vector<16x32xbf16>, vector<16x32xf32> -> vector<16x32xf32>
    %205 = arith.addf %184, %204 : vector<16x32xf32>
    %c14 = arith.constant 14 : index
    %c0_60 = arith.constant 0 : index
    %206 = vector.load %arg4[%c14, %c0_60] : memref<24x128xf32, #tpu.memory_space<vmem>>, vector<1x32xf32>
    %207 = vector.broadcast %206 : vector<1x32xf32> to vector<16x32xf32>
    %208 = arith.addf %205, %207 : vector<16x32xf32>
    %209 = arith.addf %154, %208 : vector<16x32xf32>
    %c15 = arith.constant 15 : index
    %c0_61 = arith.constant 0 : index
    %210 = vector.load %arg4[%c15, %c0_61] : memref<24x128xf32, #tpu.memory_space<vmem>>, vector<1x32xf32>
    %c16 = arith.constant 16 : index
    %c0_62 = arith.constant 0 : index
    %211 = vector.load %arg4[%c16, %c0_62] : memref<24x128xf32, #tpu.memory_space<vmem>>, vector<1x32xf32>
    %cst_63 = arith.constant dense<0.000000e+00> : vector<16xf32>
    %212 = vector.multi_reduction <add>, %209, %cst_63 [1] : vector<16x32xf32> to vector<16xf32>
    %213 = vector.shape_cast %212 : vector<16xf32> to vector<16x1xf32>
    %cst_64 = arith.constant 3.200000e+01 : f32
    %214 = vector.broadcast %cst_64 : f32 to vector<16x1xf32>
    %215 = arith.divf %213, %214 : vector<16x1xf32>
    %216 = vector.broadcast %215 : vector<16x1xf32> to vector<16x32xf32>
    %217 = arith.subf %209, %216 : vector<16x32xf32>
    %218 = arith.mulf %217, %217 : vector<16x32xf32>
    %cst_65 = arith.constant dense<0.000000e+00> : vector<16xf32>
    %219 = vector.multi_reduction <add>, %218, %cst_65 [1] : vector<16x32xf32> to vector<16xf32>
    %220 = vector.shape_cast %219 : vector<16xf32> to vector<16x1xf32>
    %cst_66 = arith.constant 3.200000e+01 : f32
    %221 = vector.broadcast %cst_66 : f32 to vector<16x1xf32>
    %222 = arith.divf %220, %221 : vector<16x1xf32>
    %223 = vector.broadcast %215 : vector<16x1xf32> to vector<16x32xf32>
    %224 = arith.subf %209, %223 : vector<16x32xf32>
    %cst_67 = arith.constant 9.99999996E-13 : f32
    %225 = vector.broadcast %cst_67 : f32 to vector<16x1xf32>
    %226 = arith.addf %222, %225 : vector<16x1xf32>
    %227 = math.rsqrt %226 : vector<16x1xf32>
    %228 = vector.broadcast %227 : vector<16x1xf32> to vector<16x32xf32>
    %229 = arith.mulf %224, %228 : vector<16x32xf32>
    %230 = vector.broadcast %210 : vector<1x32xf32> to vector<16x32xf32>
    %231 = arith.mulf %229, %230 : vector<16x32xf32>
    %232 = vector.broadcast %211 : vector<1x32xf32> to vector<16x32xf32>
    %233 = arith.addf %231, %232 : vector<16x32xf32>
    %c64_68 = arith.constant 64 : index
    %c64_69 = arith.constant 64 : index
    %234 = vector.load %arg3[%c64_68, %c64_69] : memref<192x128xbf16, #tpu.memory_space<vmem>>, vector<32x64xbf16>
    %c96_70 = arith.constant 96 : index
    %c32_71 = arith.constant 32 : index
    %235 = vector.load %arg3[%c96_70, %c32_71] : memref<192x128xbf16, #tpu.memory_space<vmem>>, vector<64x32xbf16>
    %236 = arith.truncf %233 : vector<16x32xf32> to vector<16x32xbf16>
    %cst_72 = arith.constant dense<0.000000e+00> : vector<16x64xf32>
    %237 = tpu.matmul %236, %234, %cst_72 {dimension_numbers = #tpu.dot_dimension_numbers<[1], [0], [0], [1], [0, 0, 1, 1], [], []>} : vector<16x32xbf16>, vector<32x64xbf16>, vector<16x64xf32> -> vector<16x64xf32>
    %c17 = arith.constant 17 : index
    %c0_73 = arith.constant 0 : index
    %238 = vector.load %arg4[%c17, %c0_73] : memref<24x128xf32, #tpu.memory_space<vmem>>, vector<1x64xf32>
    %239 = vector.broadcast %238 : vector<1x64xf32> to vector<16x64xf32>
    %240 = arith.addf %237, %239 : vector<16x64xf32>
    %cst_74 = arith.constant 5.000000e-01 : f32
    %241 = vector.broadcast %cst_74 : f32 to vector<16x64xf32>
    %242 = arith.mulf %241, %240 : vector<16x64xf32>
    %cst_75 = arith.constant 4.471500e-02 : f32
    %243 = vector.broadcast %cst_75 : f32 to vector<16x64xf32>
    %244 = arith.mulf %243, %240 : vector<16x64xf32>
    %245 = arith.mulf %244, %240 : vector<16x64xf32>
    %246 = arith.mulf %245, %240 : vector<16x64xf32>
    %247 = arith.addf %240, %246 : vector<16x64xf32>
    %cst_76 = arith.constant 0.797884583 : f32
    %248 = vector.broadcast %cst_76 : f32 to vector<16x64xf32>
    %249 = arith.mulf %248, %247 : vector<16x64xf32>
    %250 = math.tanh %249 : vector<16x64xf32>
    %cst_77 = arith.constant 1.000000e+00 : f32
    %251 = vector.broadcast %cst_77 : f32 to vector<16x64xf32>
    %252 = arith.addf %251, %250 : vector<16x64xf32>
    %253 = arith.mulf %242, %252 : vector<16x64xf32>
    %254 = arith.truncf %253 : vector<16x64xf32> to vector<16x64xbf16>
    %cst_78 = arith.constant dense<0.000000e+00> : vector<16x32xf32>
    %255 = tpu.matmul %254, %235, %cst_78 {dimension_numbers = #tpu.dot_dimension_numbers<[1], [0], [0], [1], [0, 0, 1, 1], [], []>} : vector<16x64xbf16>, vector<64x32xbf16>, vector<16x32xf32> -> vector<16x32xf32>
    %c18 = arith.constant 18 : index
    %c0_79 = arith.constant 0 : index
    %256 = vector.load %arg4[%c18, %c0_79] : memref<24x128xf32, #tpu.memory_space<vmem>>, vector<1x32xf32>
    %257 = vector.broadcast %256 : vector<1x32xf32> to vector<16x32xf32>
    %258 = arith.addf %255, %257 : vector<16x32xf32>
    %259 = arith.addf %233, %258 : vector<16x32xf32>
    %c19 = arith.constant 19 : index
    %c0_80 = arith.constant 0 : index
    %260 = vector.load %arg4[%c19, %c0_80] : memref<24x128xf32, #tpu.memory_space<vmem>>, vector<1x32xf32>
    %c20 = arith.constant 20 : index
    %c0_81 = arith.constant 0 : index
    %261 = vector.load %arg4[%c20, %c0_81] : memref<24x128xf32, #tpu.memory_space<vmem>>, vector<1x32xf32>
    %cst_82 = arith.constant dense<0.000000e+00> : vector<16xf32>
    %262 = vector.multi_reduction <add>, %259, %cst_82 [1] : vector<16x32xf32> to vector<16xf32>
    %263 = vector.shape_cast %262 : vector<16xf32> to vector<16x1xf32>
    %cst_83 = arith.constant 3.200000e+01 : f32
    %264 = vector.broadcast %cst_83 : f32 to vector<16x1xf32>
    %265 = arith.divf %263, %264 : vector<16x1xf32>
    %266 = vector.broadcast %265 : vector<16x1xf32> to vector<16x32xf32>
    %267 = arith.subf %259, %266 : vector<16x32xf32>
    %268 = arith.mulf %267, %267 : vector<16x32xf32>
    %cst_84 = arith.constant dense<0.000000e+00> : vector<16xf32>
    %269 = vector.multi_reduction <add>, %268, %cst_84 [1] : vector<16x32xf32> to vector<16xf32>
    %270 = vector.shape_cast %269 : vector<16xf32> to vector<16x1xf32>
    %cst_85 = arith.constant 3.200000e+01 : f32
    %271 = vector.broadcast %cst_85 : f32 to vector<16x1xf32>
    %272 = arith.divf %270, %271 : vector<16x1xf32>
    %273 = vector.broadcast %265 : vector<16x1xf32> to vector<16x32xf32>
    %274 = arith.subf %259, %273 : vector<16x32xf32>
    %cst_86 = arith.constant 9.99999996E-13 : f32
    %275 = vector.broadcast %cst_86 : f32 to vector<16x1xf32>
    %276 = arith.addf %272, %275 : vector<16x1xf32>
    %277 = math.rsqrt %276 : vector<16x1xf32>
    %278 = vector.broadcast %277 : vector<16x1xf32> to vector<16x32xf32>
    %279 = arith.mulf %274, %278 : vector<16x32xf32>
    %280 = vector.broadcast %260 : vector<1x32xf32> to vector<16x32xf32>
    %281 = arith.mulf %279, %280 : vector<16x32xf32>
    %282 = vector.broadcast %261 : vector<1x32xf32> to vector<16x32xf32>
    %283 = arith.addf %281, %282 : vector<16x32xf32>
    %284 = tpu.iota {dimensions = array<i32: 1>} : vector<2x16xi32>
    %285 = tpu.iota {dimensions = array<i32: 0>} : vector<2x16xi32>
    %c8_i32 = arith.constant 8 : i32
    %286 = vector.broadcast %c8_i32 : i32 to vector<2x16xi32>
    %287 = arith.muli %285, %286 : vector<2x16xi32>
    %288 = arith.cmpi eq, %284, %287 : vector<2x16xi32>
    %289 = arith.extui %288 : vector<2x16xi1> to vector<2x16xi32>
    %290 = arith.sitofp %289 : vector<2x16xi32> to vector<2x16xf32>
    %291 = arith.truncf %290 : vector<2x16xf32> to vector<2x16xbf16>
    %292 = arith.truncf %283 : vector<16x32xf32> to vector<16x32xbf16>
    %cst_87 = arith.constant dense<0.000000e+00> : vector<2x32xf32>
    %293 = tpu.matmul %291, %292, %cst_87 {dimension_numbers = #tpu.dot_dimension_numbers<[1], [0], [0], [1], [0, 0, 1, 1], [], []>} : vector<2x16xbf16>, vector<16x32xbf16>, vector<2x32xf32> -> vector<2x32xf32>
    %c160 = arith.constant 160 : index
    %c0_88 = arith.constant 0 : index
    %294 = vector.load %arg3[%c160, %c0_88] : memref<192x128xbf16, #tpu.memory_space<vmem>>, vector<32x32xbf16>
    %295 = arith.truncf %293 : vector<2x32xf32> to vector<2x32xbf16>
    %cst_89 = arith.constant dense<0.000000e+00> : vector<2x32xf32>
    %296 = tpu.matmul %295, %294, %cst_89 {dimension_numbers = #tpu.dot_dimension_numbers<[1], [0], [0], [1], [0, 0, 1, 1], [], []>} : vector<2x32xbf16>, vector<32x32xbf16>, vector<2x32xf32> -> vector<2x32xf32>
    %c2 = arith.constant 2 : index
    %c0_90 = arith.constant 0 : index
    %297 = vector.load %arg4[%c2, %c0_90] : memref<24x128xf32, #tpu.memory_space<vmem>>, vector<1x32xf32>
    %298 = vector.broadcast %297 : vector<1x32xf32> to vector<2x32xf32>
    %299 = arith.addf %296, %298 : vector<2x32xf32>
    %300 = math.tanh %299 : vector<2x32xf32>
    %c4 = arith.constant 4 : index
    %c0_91 = arith.constant 0 : index
    %301 = vector.load %arg4[%c4, %c0_91] : memref<24x128xf32, #tpu.memory_space<vmem>>, vector<1x32xf32>
    %302 = vector.broadcast %301 : vector<1x32xf32> to vector<2x32xf32>
    %303 = arith.mulf %300, %302 : vector<2x32xf32>
    %cst_92 = arith.constant dense<0.000000e+00> : vector<2xf32>
    %304 = vector.multi_reduction <add>, %303, %cst_92 [1] : vector<2x32xf32> to vector<2xf32>
    %305 = vector.shape_cast %304 : vector<2xf32> to vector<2x1xf32>
    %c3 = arith.constant 3 : index
    %c0_93 = arith.constant 0 : index
    %306 = vector.load %arg4[%c3, %c0_93] : memref<24x128xf32, #tpu.memory_space<vmem>>, vector<1x1xf32>
    %307 = vector.broadcast %306 : vector<1x1xf32> to vector<2x1xf32>
    %308 = arith.addf %305, %307 : vector<2x1xf32>
    %cst_94 = arith.constant 0.000000e+00 : f32
    %309 = vector.broadcast %cst_94 : f32 to vector<2x1xf32>
    %310 = arith.subf %309, %308 : vector<2x1xf32>
    %311 = math.exp %310 : vector<2x1xf32>
    %cst_95 = arith.constant 1.000000e+00 : f32
    %312 = vector.broadcast %cst_95 : f32 to vector<2x1xf32>
    %313 = arith.addf %312, %311 : vector<2x1xf32>
    %cst_96 = arith.constant 1.000000e+00 : f32
    %314 = vector.broadcast %cst_96 : f32 to vector<2x1xf32>
    %315 = arith.divf %314, %313 : vector<2x1xf32>
    %316 = vector.shape_cast %315 : vector<2x1xf32> to vector<2x1xf32>
    %317 = vector.broadcast %316 : vector<2x1xf32> to vector<2x128xf32>
    %c0_97 = arith.constant 0 : index
    %c0_98 = arith.constant 0 : index
    %318 = vector.load %arg5[%c0_97, %c0_98] : memref<2x128xf32, #tpu.memory_space<vmem>>, vector<2x128xf32>
    tpu.vector_store %arg5[%c0_97, %c0_98], %317 {strides = array<i32>} : memref<2x128xf32, #tpu.memory_space<vmem>>, vector<2x128xf32>,
    return
  }
  func.func @transform_0(%arg0: i32) -> (i32, i32) {
    %c0_i32 = arith.constant 0 : i32
    %c0_i32_0 = arith.constant 0 : i32
    %c0_i32_1 = arith.constant 0 : i32
    return %c0_i32, %c0_i32_0 : i32, i32
  }
  func.func @transform_1(%arg0: i32) -> (i32, i32) {
    %c0_i32 = arith.constant 0 : i32
    %c0_i32_0 = arith.constant 0 : i32
    %c0_i32_1 = arith.constant 0 : i32
    return %c0_i32, %c0_i32_0 : i32, i32
  }
  func.func @transform_2(%arg0: i32) -> (i32, i32) {
    %c0_i32 = arith.constant 0 : i32
    %c0_i32_0 = arith.constant 0 : i32
    %c0_i32_1 = arith.constant 0 : i32
    return %c0_i32, %c0_i32_0 : i32, i32
  }
  func.func @transform_3(%arg0: i32) -> (i32, i32) {
    %c0_i32 = arith.constant 0 : i32
    %c0_i32_0 = arith.constant 0 : i32
    %c0_i32_1 = arith.constant 0 : i32
    return %c0_i32, %c0_i32_0 : i32, i32
  }
  func.func @transform_4(%arg0: i32) -> (i32, i32) {
    %c0_i32 = arith.constant 0 : i32
    %c0_i32_0 = arith.constant 0 : i32
    %c0_i32_1 = arith.constant 0 : i32
    return %c0_i32, %c0_i32_0 : i32, i32
  }
}

</mosaic_0001>

<bundles_post_ra>
// kernel: long_model_forward.1
= control target key start
LH: loop header
LB: loop body
LE: loop exit
PB: predicated region body
PF: predicated region fallthrough
CT: control target
= control target key end

     0   :  { %vm22_vm0 = vcmask 261120   ;;  %v1616_v14 = vmov 0.0   ;;  %vm1617_vm1 = vmmov 0   ;;  %s1618_s28 = smov 80   ;;  %s1619_s29 = smov 96   ;;  %vm134_vm2 = vcmask 130048   ;;  %s1963_s0 = inlined_call_operand.vmem [shape: f32[16,32], index: 0, kind: input, shape index: {}]   ;;  %s1964_s2 = inlined_call_operand.vmem [shape: bf16[192,128], index: 2, kind: input, shape index: {}]   ;;  %s1965_s3 = inlined_call_operand.vmem [shape: f32[24,128], index: 3, kind: input, shape index: {}]   ;;  %s1966_s1 = inlined_call_operand.vmem [shape: f32[16,16], index: 1, kind: input, shape index: {}]   ;;  %s1967_s4 = inlined_call_operand.vmem [shape: f32[2,128], index: 4, kind: output, shape index: {}]  }
   0x1   :  { %v18_v0 = vld [vmem:[%s1963_s0] sm:$0xff]  ;;  %v19_v1 = vld [vmem:[%s1963_s0 + $0x8] sm:$0xff]  ;;  %1410 = vmatprep.subr.bf16.mxu0 %v1616_v14  ;;  %1414 = vmatprep.mubr.msk.bf16.mxu0 %vm1617_vm1, %v1616_v14  ;;  %s1620_s30 = smov 112   ;;  %s1622_s9 = smov 64   ;;  %vm544_vm3 = vcmask 523264   ;;  %vm1291_vm5 = vcmask 254976  }
   0x2   :  { %v23_v2 = vsel %vm22_vm0, %v18_v0, 0.0  ;;  %v26_v3 = vsel %vm22_vm0, %v19_v1, 0.0  ;;  %v1538_v15 = vld [vmem:[%s1964_s2 + $0x8] sm:$0xff]   ;;  %1418 = vmatprep.subr.bf16.mxu1 %v1616_v14  ;;  %1420 = vmatprep.mubr.msk.bf16.mxu1 %vm1617_vm1, %v1616_v14  ;;  %v1539_v16 = vld [vmem:[%s1964_s2] sm:$0xff]  }
   0x3   :  { %24 = vadd.xlane.f32.xlu0 %v23_v2  ;;  %1411 = vmatpush3.bf16.msra.mxu0 %v1538_v15  ;;  %v1317_v25 = vld [vmem:[%s1965_s3] ss:$0 sm:$0xff]  ;;  %v1318_v29 = vld [vmem:[%s1965_s3 + $0x1] ss:$0 sm:$0xff]  ;;  %v1319_v35 = vld [vmem:[%s1965_s3 + $0x5] ss:$0 sm:$0xff] }
   0x4   :  { %1412 = vmatprep.subr.bf16.mxu0 %v1616_v14  ;;  %v1713_v47 = vld [vmem:[%s1966_s1] sm:$0xff]  ;;  %v1720_v54 = vld [vmem:[%s1966_s1 + $0x8] sm:$0xff]  ;;  %s1621_s1 = smov 32  }
   0x7   :  { %27 = vadd.xlane.f32.xlu0 %v26_v3  ;;  %1413 = vmatpush3.bf16.msra.mxu0 %v1539_v16 }
   0x8   :  { %1424 = vmatprep.subr.bf16.mxu0 %v1616_v14 }
  0x8c   :  { %v25_v4 = vpop.xlane.xlu0 %24 }
  0x8d   :  { %v30_v5 = vmul.f32 0.03125, %v25_v4 }
  0x8f   :  { %v32_v6 = vsub.f32 %v18_v0, %v30_v5 }
  0x90   :  { %v28_v7 = vpop.xlane.xlu0 %27 }
  0x91   :  { %v31_v8 = vmul.f32 0.03125, %v28_v7  ;;  %v34_v9 = vmul.f32 %v32_v6, %v32_v6 }
  0x93   :  { %v33_v10 = vsub.f32 %v19_v1, %v31_v8  ;;  %v36_v11 = vsel %vm22_vm0, %v34_v9, 0.0 }
  0x94   :  { %37 = vadd.xlane.f32.xlu1 %v36_v11 }
  0x95   :  { %v35_v12 = vmul.f32 %v33_v10, %v33_v10 }
  0x97   :  { %v39_v13 = vsel %vm22_vm0, %v35_v12, 0.0 }
  0x98   :  { %40 = vadd.xlane.f32.xlu1 %v39_v13 }
 0x11d   :  { %v38_v17 = vpop.xlane.xlu1 %37 }
 0x11e   :  { %v42_v18 = vmul.f32 0.03125, %v38_v17 }
 0x120   :  { %v44_v19 = vadd.f32 1e-12, %v42_v18 }
 0x121   :  { %v41_v20 = vpop.xlane.xlu1 %40 }
 0x122   :  { %1550 = vrsqrt.f32 %v44_v19  ;;  %v43_v21 = vmul.f32 0.03125, %v41_v20 }
 0x124   :  { %v45_v22 = vadd.f32 1e-12, %v43_v21 }
 0x126   :  { %1552 = vrsqrt.f32 %v45_v22 }
 0x12f   :  { %v1551_v23 = vpop.eup %1550 }
 0x130   :  { %v48_v24 = vmul.f32 %v1551_v23, %v32_v6 }
 0x132   :  { %v54_v28 = vmul.f32 %v1317_v25, %v48_v24 }
 0x133   :  { %v1553_v26 = vpop.eup %1552 }
 0x134   :  { %v49_v27 = vmul.f32 %v1553_v26, %v33_v10  ;;  %v1679_v31 = vadd.f32 %v1318_v29, %v54_v28 }
 0x136   :  { %v55_v30 = vmul.f32 %v1317_v25, %v49_v27 }
 0x138   :  { %v1681_v32 = vadd.f32 %v1318_v29, %v55_v30 }
 0x13a   :  { %v68_v33 = vpack.c.bf16 %v1681_v32, %v1679_v31 }
 0x13c   :  { %1415 = vmatmul.mubr.msk.bf16.vlgmr.msra.gmra.mxu0 %vm22_vm0, %v68_v33 }
 0x13d   :  { %1426 = vmatprep.mubr.msk.bf16.mxu0 %vm1617_vm1, %v1616_v14 }
 0x1fc   :  { %v123_v34 = vpop.f32.mrf.mxu0 }
 0x1fd   :  { %v124_v38 = vadd.f32 %v1319_v35, %v123_v34 }
 0x1fe   :  { %v1416_v36 = vpop.f32.mrf.mxu0 }
 0x200   :  { %v126_v37 = vpop.f32.mrf.mxu0 }
 0x201   :  { %v127_v39 = vadd.f32 %v1319_v35, %v126_v37 }
 0x202   :  { %v1417_v40 = vpop.f32.mrf.mxu0 }
 0x203   :  { %v1691_v41 = vpack.c.bf16 %v127_v39, %v124_v38 }
 0x205   :  { %207 = vrot.lane.b32.xlu1 %v1691_v41, %s1618_s28  ;;  %132 = vrot.lane.b32.xlu0 %v1691_v41, %s1619_s29 }
 0x209   :  { %205 = vrot.lane.b32.xlu1 %v1691_v41, %s1620_s30 }
 0x277   :  { %v208_v42 = vpop.permute.xlu1 %207  ;;  %v133_v43 = vpop.permute.xlu0 %132 }
 0x278   :  { %v213_v44 = vsel %vm134_vm2, %v208_v42, 0  ;;  %v139_v45 = vsel %vm134_vm2, %v133_v43, 0  ;;  %v1327_v43 = vld [vmem:[%s1965_s3 + $0x6] ss:$0 sm:$0xff] }
 0x279   :  { %1419 = vmatpush3.bf16.xpose.msra.mxu1 %v139_v45  ;;  %1425 = vmatpush3.bf16.xpose.msra.mxu0 %v213_v44 }
 0x27a   :  { %1430 = vmatprep.subr.bf16.mxu1 %v1616_v14  ;;  %1436 = vmatprep.subr.bf16.mxu0 %v1616_v14 }
 0x27b   :  { %v206_v46 = vpop.permute.xlu1 %205 }
 0x280   :  { %1421 = vmatmul.mubr.msk.bf16.vlgmr.msra.gmra.mxu1 %vm134_vm2, %v1691_v41  ;;  %1427 = vmatmul.mubr.msk.bf16.vlgmr.msra.gmra.mxu0 %vm134_vm2, %v206_v46 }
 0x281   :  { %1438 = vmatprep.mubr.msk.bf16.mxu0 %vm1617_vm1, %v1616_v14  ;;  %1432 = vmatprep.mubr.msk.bf16.mxu1 %vm1617_vm1, %v1616_v14 }
 0x340   :  { %v175_v48 = vpop.f32.mrf.mxu1  ;;  %v249_v49 = vpop.f32.mrf.mxu0 }
 0x341   :  { %v176_v50 = vadd.f32 %v175_v48, %v1713_v47  ;;  %v250_v51 = vadd.f32 %v249_v49, %v1713_v47 }
 0x342   :  { %v1422_v52 = vpop.f32.mrf.mxu1  ;;  %v1428_v53 = vpop.f32.mrf.mxu0 }
 0x343   :  { %v182_v55 = vsel %vm134_vm2, %v176_v50, -inf  ;;  %v256_v56 = vsel %vm134_vm2, %v250_v51, -inf }
 0x344   :  { %183 = vmax.xlane.f32.xlu1 %v182_v55  ;;  %v178_v57 = vpop.f32.mrf.mxu1  ;;  %257 = vmax.xlane.f32.xlu0 %v256_v56  ;;  %v252_v58 = vpop.f32.mrf.mxu0 }
 0x345   :  { %v179_v59 = vadd.f32 %v178_v57, %v1720_v54  ;;  %v253_v62 = vadd.f32 %v252_v58, %v1720_v54 }
 0x346   :  { %v1423_v60 = vpop.f32.mrf.mxu1  ;;  %v1429_v61 = vpop.f32.mrf.mxu0 }
 0x347   :  { %v185_v63 = vsel %vm134_vm2, %v179_v59, -inf  ;;  %v259_v0 = vsel %vm134_vm2, %v253_v62, -inf }
 0x348   :  { %186 = vmax.xlane.f32.xlu0 %v185_v63 }
 0x34c   :  { %260 = vmax.xlane.f32.xlu0 %v259_v0 }
 0x3cd   :  { %v184_v1 = vpop.xlane.xlu1 %183  ;;  %v258_v2 = vpop.xlane.xlu0 %257 }
 0x3ce   :  { %v188_v3 = vsub.f32 %v176_v50, %v184_v1  ;;  %v262_v4 = vsub.f32 %v250_v51, %v258_v2 }
 0x3d0   :  { %v190_v5 = vmul.f32 1.442695, %v188_v3  ;;  %v264_v6 = vmul.f32 1.442695, %v262_v4  ;;  %v1762_v4 = vld [vmem:[%s1964_s2 + $0x20] sm:$0xff]  }
 0x3d1   :  { %v187_v7 = vpop.xlane.xlu0 %186 }
 0x3d2   :  { %1554 = vpow2.f32 %v190_v5  ;;  %v189_v8 = vsub.f32 %v179_v59, %v187_v7 }
 0x3d3   :  { %1556 = vpow2.f32 %v264_v6 }
 0x3d4   :  { %v192_v9 = vmul.f32 1.442695, %v189_v8 }
 0x3d5   :  { %v261_v10 = vpop.xlane.xlu0 %260 }
 0x3d6   :  { %1558 = vpow2.f32 %v192_v9  ;;  %v263_v11 = vsub.f32 %v253_v62, %v261_v10 }
 0x3d8   :  { %v266_v12 = vmul.f32 1.442695, %v263_v11 }
 0x3da   :  { %1560 = vpow2.f32 %v266_v12 }
 0x3df   :  { %v1555_v13 = vpop.eup %1554 }
 0x3e0   :  { %v194_v15 = vsel %vm134_vm2, %v1555_v13, 0.0  ;;  %v1557_v16 = vpop.eup %1556 }
 0x3e1   :  { %195 = vadd.xlane.f32.xlu1 %v194_v15  ;;  %v268_v18 = vsel %vm134_vm2, %v1557_v16, 0.0 }
 0x3e3   :  { %v1559_v17 = vpop.eup %1558 }
 0x3e4   :  { %v197_v19 = vsel %vm134_vm2, %v1559_v17, 0.0 }
 0x3e5   :  { %269 = vadd.xlane.f32.xlu1 %v268_v18  ;;  %198 = vadd.xlane.f32.xlu0 %v197_v19  ;;  %v1329_v18 = vld [vmem:[%s1965_s3 + $0x8] ss:$0 sm:$0xff] }
 0x3e7   :  { %v1561_v20 = vpop.eup %1560 }
 0x3e8   :  { %v271_v21 = vsel %vm134_vm2, %v1561_v20, 0.0 }
 0x3e9   :  { %272 = vadd.xlane.f32.xlu0 %v271_v21 }
 0x3f6   :  { %279 = vrot.lane.b32.xlu1 %v1691_v41, %s1621_s1 }
 0x3ff   :  { %326 = vrot.lane.b32.xlu0 %v1691_v41, %s1622_s9 }
 0x46a   :  { %v196_v22 = vpop.xlane.xlu1 %195 }
 0x46b   :  { %1562 = vrcp.f32 %v196_v22 }
 0x46e   :  { %v270_v23 = vpop.xlane.xlu1 %269  ;;  %v199_v24 = vpop.xlane.xlu0 %198 }
 0x46f   :  { %1564 = vrcp.f32 %v199_v24  ;;  %v1785_v24 = vld [vmem:[%s1964_s2 + $0x40] sm:$0xff]  }
 0x470   :  { %1566 = vrcp.f32 %v270_v23  ;;  %v1779_v23 = vld [vmem:[%s1964_s2 + $0x48] sm:$0xff]  }
 0x472   :  { %v280_v25 = vpop.permute.xlu1 %279  ;;  %v273_v26 = vpop.xlane.xlu0 %272 }
 0x473   :  { %1568 = vrcp.f32 %v273_v26  ;;  %1431 = vmatpush3.bf16.msra.mxu1 %v280_v25  ;;  %v1792_v25 = vld [vmem:[%s1964_s2 + $0x38] sm:$0xff]   ;;  %v1799_v26 = vld [vmem:[%s1964_s2 + $0x30] sm:$0xff]  }
 0x474   :  { %1442 = vmatprep.subr.bf16.mxu1 %v1616_v14 }
 0x476   :  { %v327_v27 = vpop.permute.xlu0 %326 }
 0x477   :  { %1437 = vmatpush3.bf16.msra.mxu0 %v327_v27  ;;  %v1330_v27 = vld [vmem:[%s1965_s3 + $0x9] ss:$0 sm:$0xff] }
 0x478   :  { %1450 = vmatprep.subr.bf16.mxu0 %v1616_v14  ;;  %v1563_v28 = vpop.eup %1562 }
 0x479   :  { %v202_v33 = vmul.f32 %v1563_v28, %v1555_v13  ;;  %v1328_v13 = vld [vmem:[%s1965_s3 + $0x7] ss:$0 sm:$0xff] }
 0x47c   :  { %v1565_v29 = vpop.eup %1564 }
 0x47d   :  { %v1567_v30 = vpop.eup %1566  ;;  %v203_v34 = vmul.f32 %v1565_v29, %v1559_v17 }
 0x47e   :  { %v276_v37 = vmul.f32 %v1567_v30, %v1557_v16 }
 0x47f   :  { %v204_v36 = vpack.c.bf16 %v203_v34, %v202_v33 }
 0x480   :  { %v1569_v35 = vpop.eup %1568 }
 0x481   :  { %v277_v38 = vmul.f32 %v1569_v35, %v1561_v20  ;;  %1439 = vmatmul.mubr.msk.bf16.vlgmr.msra.gmra.mxu0 %vm134_vm2, %v204_v36 }
 0x482   :  { %1458 = vmatprep.mubr.msk.bf16.mxu0 %vm1617_vm1, %v1616_v14  ;;  %1451 = vmatpush3.bf16.msra.mxu0 %v1779_v23 }
 0x483   :  { %v278_v39 = vpack.c.bf16 %v277_v38, %v276_v37  ;;  %1452 = vmatprep.subr.bf16.mxu0 %v1616_v14 }
 0x485   :  { %1433 = vmatmul.mubr.msk.bf16.vlgmr.msra.gmra.mxu1 %vm134_vm2, %v278_v39 }
 0x486   :  { %1446 = vmatprep.mubr.msk.bf16.mxu1 %vm1617_vm1, %v1616_v14  ;;  %1453 = vmatpush3.bf16.msra.mxu0 %v1785_v24 }
 0x487   :  { %1454 = vmatprep.subr.bf16.mxu0 %v1616_v14 }
 0x48a   :  { %1455 = vmatpush3.bf16.msra.mxu0 %v1792_v25 }
 0x48b   :  { %1456 = vmatprep.subr.bf16.mxu0 %v1616_v14 }
 0x48e   :  { %1457 = vmatpush3.bf16.msra.mxu0 %v1799_v26 }
 0x48f   :  { %1476 = vmatprep.subr.bf16.mxu0 %v1616_v14 }
 0x541   :  { %v366_v40 = vpop.f32.mrf.mxu0 }
 0x543   :  { %v1440_v41 = vpop.f32.mrf.mxu0 }
 0x545   :  { %v319_v42 = vpop.f32.mrf.mxu1  ;;  %v369_v45 = vpop.f32.mrf.mxu0 }
 0x546   :  { %v367_v44 = vadd.f32 %v366_v40, %v319_v42 }
 0x547   :  { %v1434_v46 = vpop.f32.mrf.mxu1  ;;  %v1441_v49 = vpop.f32.mrf.mxu0 }
 0x548   :  { %v378_v48 = vadd.f32 %v1327_v43, %v367_v44 }
 0x549   :  { %v322_v50 = vpop.f32.mrf.mxu1 }
 0x54a   :  { %v370_v51 = vadd.f32 %v369_v45, %v322_v50  ;;  %v380_v52 = vadd.f32 %v378_v48, %v1679_v31 }
 0x54b   :  { %v1435_v53 = vpop.f32.mrf.mxu1 }
 0x54c   :  { %v379_v55 = vadd.f32 %v1327_v43, %v370_v51  ;;  %v384_v56 = vsel %vm22_vm0, %v380_v52, 0.0 }
 0x54d   :  { %385 = vadd.xlane.f32.xlu1 %v384_v56 }
 0x54e   :  { %v381_v57 = vadd.f32 %v379_v55, %v1681_v32  ;;  %v1756_v32 = vld [vmem:[%s1964_s2 + $0x28] sm:$0xff]  }
 0x54f   :  { %1443 = vmatpush3.bf16.msra.mxu1 %v1756_v32 }
 0x550   :  { %v387_v58 = vsel %vm22_vm0, %v381_v57, 0.0  ;;  %1444 = vmatprep.subr.bf16.mxu1 %v1616_v14 }
 0x551   :  { %388 = vadd.xlane.f32.xlu0 %v387_v58 }
 0x553   :  { %1445 = vmatpush3.bf16.msra.mxu1 %v1762_v4 }
 0x554   :  { %1462 = vmatprep.subr.bf16.mxu1 %v1616_v14 }
 0x5d6   :  { %v386_v59 = vpop.xlane.xlu1 %385 }
 0x5d7   :  { %v390_v60 = vmul.f32 0.03125, %v386_v59 }
 0x5d9   :  { %v392_v61 = vsub.f32 %v380_v52, %v390_v60 }
 0x5da   :  { %v389_v62 = vpop.xlane.xlu0 %388 }
 0x5db   :  { %v391_v63 = vmul.f32 0.03125, %v389_v62  ;;  %v394_v0 = vmul.f32 %v392_v61, %v392_v61 }
 0x5dd   :  { %v393_v1 = vsub.f32 %v381_v57, %v391_v63  ;;  %v396_v2 = vsel %vm22_vm0, %v394_v0, 0.0  ;;  %v1334_v57 = vld [vmem:[%s1965_s3 + $0xa] ss:$0 sm:$0xff] }
 0x5de   :  { %397 = vadd.xlane.f32.xlu1 %v396_v2 }
 0x5df   :  { %v395_v31 = vmul.f32 %v393_v1, %v393_v1 }
 0x5e1   :  { %v399_v3 = vsel %vm22_vm0, %v395_v31, 0.0 }
 0x5e2   :  { %400 = vadd.xlane.f32.xlu0 %v399_v3 }
 0x667   :  { %v398_v5 = vpop.xlane.xlu1 %397 }
 0x668   :  { %v402_v6 = vmul.f32 0.03125, %v398_v5 }
 0x66a   :  { %v404_v7 = vadd.f32 1e-12, %v402_v6 }
 0x66b   :  { %v401_v8 = vpop.xlane.xlu0 %400 }
 0x66c   :  { %1570 = vrsqrt.f32 %v404_v7  ;;  %v403_v9 = vmul.f32 0.03125, %v401_v8 }
 0x66e   :  { %v405_v10 = vadd.f32 1e-12, %v403_v9 }
 0x670   :  { %1572 = vrsqrt.f32 %v405_v10 }
 0x679   :  { %v1571_v11 = vpop.eup %1570 }
 0x67a   :  { %v408_v12 = vmul.f32 %v1571_v11, %v392_v61 }
 0x67c   :  { %v414_v17 = vmul.f32 %v1328_v13, %v408_v12 }
 0x67d   :  { %v1573_v15 = vpop.eup %1572 }
 0x67e   :  { %v409_v16 = vmul.f32 %v1573_v15, %v393_v1  ;;  %v420_v20 = vadd.f32 %v1329_v18, %v414_v17  ;;  %v1546_v15 = vld [vmem:[%s1964_s2 + $0x18] sm:$0xff]  }
 0x680   :  { %v415_v19 = vmul.f32 %v1328_v13, %v409_v16  ;;  %v1547_v16 = vld [vmem:[%s1964_s2 + $0x10] sm:$0xff]  }
 0x682   :  { %v421_v21 = vadd.f32 %v1329_v18, %v415_v19 }
 0x684   :  { %v434_v22 = vpack.c.bf16 %v421_v21, %v420_v20 }
 0x686   :  { %1447 = vmatmul.mubr.msk.bf16.vlgmr.msra.gmra.mxu1 %vm22_vm0, %v434_v22 }
 0x687   :  { %1466 = vmatprep.mubr.msk.bf16.mxu1 %vm1617_vm1, %v1616_v14  ;;  %1463 = vmatpush3.bf16.msra.mxu1 %v1546_v15 }
 0x688   :  { %1464 = vmatprep.subr.bf16.mxu1 %v1616_v14 }
 0x68b   :  { %1465 = vmatpush3.bf16.msra.mxu1 %v1547_v16 }
 0x68c   :  { %1470 = vmatprep.subr.bf16.mxu1 %v1616_v14 }
 0x746   :  { %v489_v28 = vpop.f32.mrf.mxu1 }
 0x747   :  { %v490_v29 = vadd.f32 %v1330_v27, %v489_v28 }
 0x748   :  { %v1448_v30 = vpop.f32.mrf.mxu1 }
 0x749   :  { %v498_v33 = vmul.f32 0.044715, %v490_v29  ;;  %v496_v50 = vmul.f32 0.5, %v490_v29 }
 0x74a   :  { %v492_v34 = vpop.f32.mrf.mxu1 }
 0x74b   :  { %v500_v35 = vmul.f32 %v498_v33, %v490_v29  ;;  %v493_v36 = vadd.f32 %v1330_v27, %v492_v34 }
 0x74c   :  { %v1449_v37 = vpop.f32.mrf.mxu1 }
 0x74d   :  { %v502_v38 = vmul.f32 %v500_v35, %v490_v29  ;;  %v499_v39 = vmul.f32 0.044715, %v493_v36  ;;  %v497_v51 = vmul.f32 0.5, %v493_v36  ;;  %v1341_v35 = vld [vmem:[%s1965_s3 + $0xc] ss:$0 sm:$0xff] }
 0x74f   :  { %v504_v40 = vadd.f32 %v502_v38, %v490_v29  ;;  %v501_v41 = vmul.f32 %v499_v39, %v493_v36  ;;  %v1340_v29 = vld [vmem:[%s1965_s3 + $0xb] ss:$0 sm:$0xff] }
 0x751   :  { %v506_v42 = vmul.f32 0.7978846, %v504_v40  ;;  %v503_v43 = vmul.f32 %v501_v41, %v493_v36  ;;  %v1342_v41 = vld [vmem:[%s1965_s3 + $0xd] ss:$0 sm:$0xff] }
 0x753   :  { %1574 = vtanh.f32 %v506_v42  ;;  %v505_v44 = vadd.f32 %v503_v43, %v493_v36 }
 0x755   :  { %v507_v45 = vmul.f32 0.7978846, %v505_v44 }
 0x757   :  { %1576 = vtanh.f32 %v507_v45 }
 0x760   :  { %v1575_v46 = vpop.eup %1574 }
 0x761   :  { %v510_v48 = vadd.f32 1.0, %v1575_v46 }
 0x763   :  { %v512_v53 = vmul.f32 %v510_v48, %v496_v50 }
 0x764   :  { %v1577_v49 = vpop.eup %1576 }
 0x765   :  { %v511_v52 = vadd.f32 1.0, %v1577_v49 }
 0x767   :  { %v513_v55 = vmul.f32 %v511_v52, %v497_v51 }
 0x769   :  { %v514_v56 = vpack.c.bf16 %v513_v55, %v512_v53 }
 0x76b   :  { %1459 = vmatmul.mubr.msk.bf16.vlgmr.msra.gmra.mxu0 %vm544_vm3, %v514_v56 }
 0x76c   :  { %1478 = vmatprep.mubr.msk.bf16.mxu0 %vm1617_vm1, %v1616_v14 }
 0x82b   :  { %v582_v58 = vpop.f32.mrf.mxu0 }
 0x82c   :  { %v583_v59 = vadd.f32 %v1334_v57, %v582_v58 }
 0x82d   :  { %v1460_v60 = vpop.f32.mrf.mxu0 }
 0x82e   :  { %v589_v61 = vadd.f32 %v583_v59, %v420_v20 }
 0x82f   :  { %v585_v62 = vpop.f32.mrf.mxu0 }
 0x830   :  { %v586_v63 = vadd.f32 %v1334_v57, %v585_v62  ;;  %v593_v0 = vsel %vm22_vm0, %v589_v61, 0.0 }
 0x831   :  { %594 = vadd.xlane.f32.xlu1 %v593_v0  ;;  %v1461_v1 = vpop.f32.mrf.mxu0 }
 0x832   :  { %v590_v2 = vadd.f32 %v586_v63, %v421_v21 }
 0x834   :  { %v596_v31 = vsel %vm22_vm0, %v590_v2, 0.0 }
 0x835   :  { %597 = vadd.xlane.f32.xlu0 %v596_v31 }
 0x8ba   :  { %v595_v3 = vpop.xlane.xlu1 %594 }
 0x8bb   :  { %v599_v5 = vmul.f32 0.03125, %v595_v3 }
 0x8bd   :  { %v601_v6 = vsub.f32 %v589_v61, %v599_v5 }
 0x8be   :  { %v598_v7 = vpop.xlane.xlu0 %597 }
 0x8bf   :  { %v600_v8 = vmul.f32 0.03125, %v598_v7  ;;  %v603_v9 = vmul.f32 %v601_v6, %v601_v6 }
 0x8c1   :  { %v602_v10 = vsub.f32 %v590_v2, %v600_v8  ;;  %v605_v11 = vsel %vm22_vm0, %v603_v9, 0.0 }
 0x8c2   :  { %606 = vadd.xlane.f32.xlu1 %v605_v11 }
 0x8c3   :  { %v604_v12 = vmul.f32 %v602_v10, %v602_v10 }
 0x8c5   :  { %v608_v13 = vsel %vm22_vm0, %v604_v12, 0.0 }
 0x8c6   :  { %609 = vadd.xlane.f32.xlu0 %v608_v13 }
 0x94b   :  { %v607_v17 = vpop.xlane.xlu1 %606 }
 0x94c   :  { %v611_v18 = vmul.f32 0.03125, %v607_v17 }
 0x94e   :  { %v613_v19 = vadd.f32 1e-12, %v611_v18 }
 0x94f   :  { %v610_v20 = vpop.xlane.xlu0 %609 }
 0x950   :  { %1578 = vrsqrt.f32 %v613_v19  ;;  %v612_v21 = vmul.f32 0.03125, %v610_v20 }
 0x952   :  { %v614_v22 = vadd.f32 1e-12, %v612_v21 }
 0x954   :  { %1580 = vrsqrt.f32 %v614_v22 }
 0x95d   :  { %v1579_v27 = vpop.eup %1578 }
 0x95e   :  { %v617_v28 = vmul.f32 %v1579_v27, %v601_v6 }
 0x960   :  { %v623_v34 = vmul.f32 %v1340_v29, %v617_v28 }
 0x961   :  { %v1581_v30 = vpop.eup %1580 }
 0x962   :  { %v618_v33 = vmul.f32 %v1581_v30, %v602_v10  ;;  %v1831_v37 = vadd.f32 %v1341_v35, %v623_v34 }
 0x964   :  { %v624_v36 = vmul.f32 %v1340_v29, %v618_v33 }
 0x966   :  { %v1833_v38 = vadd.f32 %v1341_v35, %v624_v36 }
 0x968   :  { %v635_v39 = vpack.c.bf16 %v1833_v38, %v1831_v37 }
 0x96a   :  { %1467 = vmatmul.mubr.msk.bf16.vlgmr.msra.gmra.mxu1 %vm22_vm0, %v635_v39 }
 0x96b   :  { %1472 = vmatprep.mubr.msk.bf16.mxu1 %vm1617_vm1, %v1616_v14 }
 0xa2a   :  { %v690_v40 = vpop.f32.mrf.mxu1 }
 0xa2b   :  { %v691_v44 = vadd.f32 %v1342_v41, %v690_v40 }
 0xa2c   :  { %v1468_v42 = vpop.f32.mrf.mxu1 }
 0xa2e   :  { %v693_v43 = vpop.f32.mrf.mxu1 }
 0xa2f   :  { %v694_v45 = vadd.f32 %v1342_v41, %v693_v43 }
 0xa30   :  { %v1469_v46 = vpop.f32.mrf.mxu1 }
 0xa31   :  { %v1843_v48 = vpack.c.bf16 %v694_v45, %v691_v44 }
 0xa33   :  { %773 = vrot.lane.b32.xlu0 %v1843_v48, %s1618_s28  ;;  %699 = vrot.lane.b32.xlu1 %v1843_v48, %s1619_s29 }
 0xa37   :  { %771 = vrot.lane.b32.xlu1 %v1843_v48, %s1620_s30 }
 0xaa5   :  { %v774_v49 = vpop.permute.xlu0 %773  ;;  %v700_v50 = vpop.permute.xlu1 %699 }
 0xaa6   :  { %v779_v51 = vsel %vm134_vm2, %v774_v49, 0  ;;  %v705_v52 = vsel %vm134_vm2, %v700_v50, 0 }
 0xaa7   :  { %1471 = vmatpush3.bf16.xpose.msra.mxu1 %v705_v52  ;;  %1477 = vmatpush3.bf16.xpose.msra.mxu0 %v779_v51 }
 0xaa8   :  { %1482 = vmatprep.subr.bf16.mxu1 %v1616_v14  ;;  %1488 = vmatprep.subr.bf16.mxu0 %v1616_v14 }
 0xaa9   :  { %v772_v53 = vpop.permute.xlu1 %771 }
 0xaae   :  { %1473 = vmatmul.mubr.msk.bf16.vlgmr.msra.gmra.mxu1 %vm134_vm2, %v1843_v48  ;;  %1479 = vmatmul.mubr.msk.bf16.vlgmr.msra.gmra.mxu0 %vm134_vm2, %v772_v53 }
 0xaaf   :  { %1490 = vmatprep.mubr.msk.bf16.mxu0 %vm1617_vm1, %v1616_v14  ;;  %1484 = vmatprep.mubr.msk.bf16.mxu1 %vm1617_vm1, %v1616_v14 }
 0xb6e   :  { %v741_v55 = vpop.f32.mrf.mxu1  ;;  %v815_v56 = vpop.f32.mrf.mxu0 }
 0xb6f   :  { %v742_v57 = vadd.f32 %v741_v55, %v1713_v47  ;;  %v816_v31 = vadd.f32 %v815_v56, %v1713_v47  ;;  %v1350_v56 = vld [vmem:[%s1965_s3 + $0xe] ss:$0 sm:$0xff] }
 0xb70   :  { %v1474_v58 = vpop.f32.mrf.mxu1  ;;  %v1480_v59 = vpop.f32.mrf.mxu0 }
 0xb71   :  { %v748_v60 = vsel %vm134_vm2, %v742_v57, -inf  ;;  %v822_v6 = vsel %vm134_vm2, %v816_v31, -inf }
 0xb72   :  { %749 = vmax.xlane.f32.xlu1 %v748_v60  ;;  %v744_v61 = vpop.f32.mrf.mxu1  ;;  %v818_v62 = vpop.f32.mrf.mxu0 }
 0xb73   :  { %v745_v63 = vadd.f32 %v744_v61, %v1720_v54  ;;  %v819_v0 = vadd.f32 %v818_v62, %v1720_v54 }
 0xb74   :  { %v1475_v1 = vpop.f32.mrf.mxu1  ;;  %v1481_v2 = vpop.f32.mrf.mxu0 }
 0xb75   :  { %v751_v3 = vsel %vm134_vm2, %v745_v63, -inf  ;;  %v825_v5 = vsel %vm134_vm2, %v819_v0, -inf }
 0xb76   :  { %752 = vmax.xlane.f32.xlu0 %v751_v3  ;;  %826 = vmax.xlane.f32.xlu1 %v825_v5 }
 0xb7a   :  { %823 = vmax.xlane.f32.xlu0 %v822_v6 }
 0xbfb   :  { %v750_v7 = vpop.xlane.xlu1 %749 }
 0xbfc   :  { %v754_v8 = vsub.f32 %v742_v57, %v750_v7 }
 0xbfe   :  { %v756_v9 = vmul.f32 1.442695, %v754_v8 }
 0xbff   :  { %v753_v10 = vpop.xlane.xlu0 %752  ;;  %v827_v11 = vpop.xlane.xlu1 %826 }
 0xc00   :  { %1582 = vpow2.f32 %v756_v9  ;;  %v755_v54 = vsub.f32 %v745_v63, %v753_v10  ;;  %v829_v12 = vsub.f32 %v819_v0, %v827_v11 }
 0xc02   :  { %v758_v13 = vmul.f32 1.442695, %v755_v54  ;;  %v832_v15 = vmul.f32 1.442695, %v829_v12 }
 0xc03   :  { %v824_v47 = vpop.xlane.xlu0 %823 }
 0xc04   :  { %1584 = vpow2.f32 %v758_v13  ;;  %v828_v16 = vsub.f32 %v816_v31, %v824_v47 }
 0xc05   :  { %1586 = vpow2.f32 %v832_v15 }
 0xc06   :  { %v830_v17 = vmul.f32 1.442695, %v828_v16 }
 0xc08   :  { %1588 = vpow2.f32 %v830_v17 }
 0xc0d   :  { %v1583_v18 = vpop.eup %1582 }
 0xc0e   :  { %v760_v19 = vsel %vm134_vm2, %v1583_v18, 0.0 }
 0xc0f   :  { %761 = vadd.xlane.f32.xlu0 %v760_v19 }
 0xc11   :  { %v1585_v20 = vpop.eup %1584 }
 0xc12   :  { %v763_v21 = vsel %vm134_vm2, %v1585_v20, 0.0  ;;  %v1587_v22 = vpop.eup %1586 }
 0xc13   :  { %764 = vadd.xlane.f32.xlu1 %v763_v21  ;;  %v837_v29 = vsel %vm134_vm2, %v1587_v22, 0.0 }
 0xc15   :  { %v1589_v27 = vpop.eup %1588 }
 0xc16   :  { %v834_v28 = vsel %vm134_vm2, %v1589_v27, 0.0 }
 0xc17   :  { %835 = vadd.xlane.f32.xlu0 %v834_v28  ;;  %838 = vadd.xlane.f32.xlu1 %v837_v29 }
 0xc28   :  { %892 = vrot.lane.b32.xlu1 %v1843_v48, %s1622_s9 }
 0xc2d   :  { %845 = vrot.lane.b32.xlu0 %v1843_v48, %s1621_s1 }
 0xc98   :  { %v762_v30 = vpop.xlane.xlu0 %761 }
 0xc99   :  { %1590 = vrcp.f32 %v762_v30 }
 0xc9c   :  { %v765_v33 = vpop.xlane.xlu1 %764 }
 0xc9d   :  { %1592 = vrcp.f32 %v765_v33 }
 0xca0   :  { %v836_v34 = vpop.xlane.xlu0 %835  ;;  %v839_v35 = vpop.xlane.xlu1 %838 }
 0xca1   :  { %1594 = vrcp.f32 %v836_v34 }
 0xca2   :  { %1596 = vrcp.f32 %v839_v35  ;;  %v1353_v35 = vld [vmem:[%s1965_s3 + $0x11] ss:$0 sm:$0xff] }
 0xca4   :  { %v846_v36 = vpop.permute.xlu0 %845  ;;  %v893_v39 = vpop.permute.xlu1 %892 }
 0xca5   :  { %1483 = vmatpush3.bf16.msra.mxu1 %v846_v36  ;;  %1489 = vmatpush3.bf16.msra.mxu0 %v893_v39 }
 0xca6   :  { %1494 = vmatprep.subr.bf16.mxu1 %v1616_v14  ;;  %1502 = vmatprep.subr.bf16.mxu0 %v1616_v14  ;;  %v1591_v40 = vpop.eup %1590 }
 0xca7   :  { %v768_v42 = vmul.f32 %v1591_v40, %v1583_v18 }
 0xcaa   :  { %v1593_v41 = vpop.eup %1592 }
 0xcab   :  { %v769_v43 = vmul.f32 %v1593_v41, %v1585_v20  ;;  %v1352_v20 = vld [vmem:[%s1965_s3 + $0x10] ss:$0 sm:$0xff] }
 0xcad   :  { %v770_v44 = vpack.c.bf16 %v769_v43, %v768_v42 }
 0xcae   :  { %v1595_v45 = vpop.eup %1594 }
 0xcaf   :  { %v1597_v46 = vpop.eup %1596  ;;  %1491 = vmatmul.mubr.msk.bf16.vlgmr.msra.gmra.mxu0 %vm134_vm2, %v770_v44  ;;  %v842_v48 = vmul.f32 %v1595_v45, %v1589_v27 }
 0xcb0   :  { %v843_v49 = vmul.f32 %v1597_v46, %v1587_v22  ;;  %1510 = vmatprep.mubr.msk.bf16.mxu0 %vm1617_vm1, %v1616_v14 }
 0xcb2   :  { %v844_v50 = vpack.c.bf16 %v843_v49, %v842_v48 }
 0xcb4   :  { %1485 = vmatmul.mubr.msk.bf16.vlgmr.msra.gmra.mxu1 %vm134_vm2, %v844_v50 }
 0xcb5   :  { %1498 = vmatprep.mubr.msk.bf16.mxu1 %vm1617_vm1, %v1616_v14 }
 0xd6f   :  { %v932_v51 = vpop.f32.mrf.mxu0 }
 0xd71   :  { %v1492_v52 = vpop.f32.mrf.mxu0 }
 0xd73   :  { %v935_v53 = vpop.f32.mrf.mxu0 }
 0xd74   :  { %v885_v55 = vpop.f32.mrf.mxu1 }
 0xd75   :  { %v933_v57 = vadd.f32 %v932_v51, %v885_v55  ;;  %v1493_v58 = vpop.f32.mrf.mxu0 }
 0xd76   :  { %v1486_v59 = vpop.f32.mrf.mxu1 }
 0xd77   :  { %v944_v60 = vadd.f32 %v1350_v56, %v933_v57 }
 0xd78   :  { %v888_v61 = vpop.f32.mrf.mxu1 }
 0xd79   :  { %v936_v62 = vadd.f32 %v935_v53, %v888_v61  ;;  %v946_v63 = vadd.f32 %v944_v60, %v1831_v37 }
 0xd7a   :  { %v1487_v0 = vpop.f32.mrf.mxu1 }
 0xd7b   :  { %v945_v1 = vadd.f32 %v1350_v56, %v936_v62  ;;  %v950_v2 = vsel %vm22_vm0, %v946_v63, 0.0 }
 0xd7c   :  { %951 = vadd.xlane.f32.xlu1 %v950_v2 }
 0xd7d   :  { %v947_v31 = vadd.f32 %v945_v1, %v1833_v38  ;;  %v1355_v1 = vld [vmem:[%s1965_s3 + $0x12] ss:$0 sm:$0xff] }
 0xd7f   :  { %v953_v3 = vsel %vm22_vm0, %v947_v31, 0.0 }
 0xd80   :  { %954 = vadd.xlane.f32.xlu0 %v953_v3 }
 0xe05   :  { %v952_v5 = vpop.xlane.xlu1 %951 }
 0xe06   :  { %v956_v6 = vmul.f32 0.03125, %v952_v5 }
 0xe08   :  { %v958_v7 = vsub.f32 %v946_v63, %v956_v6 }
 0xe09   :  { %v955_v8 = vpop.xlane.xlu0 %954 }
 0xe0a   :  { %v957_v9 = vmul.f32 0.03125, %v955_v8  ;;  %v960_v10 = vmul.f32 %v958_v7, %v958_v7 }
 0xe0c   :  { %v959_v11 = vsub.f32 %v947_v31, %v957_v9  ;;  %v962_v54 = vsel %vm22_vm0, %v960_v10, 0.0 }
 0xe0d   :  { %963 = vadd.xlane.f32.xlu0 %v962_v54 }
 0xe0e   :  { %v961_v37 = vmul.f32 %v959_v11, %v959_v11 }
 0xe10   :  { %v965_v12 = vsel %vm22_vm0, %v961_v37, 0.0 }
 0xe11   :  { %966 = vadd.xlane.f32.xlu1 %v965_v12 }
 0xe22   :  { %994 = vrot.lane.b32.xlu1 %v1762_v4, %s1622_s9 }
 0xe23   :  { %996 = vrot.lane.b32.xlu0 %v1756_v32, %s1622_s9 }
 0xe26   :  { %1074 = vrot.lane.b32.xlu1 %v1779_v23, %s1619_s29 }
 0xe27   :  { %1070 = vrot.lane.b32.xlu0 %v1792_v25, %s1619_s29 }
 0xe2a   :  { %1072 = vrot.lane.b32.xlu1 %v1785_v24, %s1619_s29 }
 0xe2e   :  { %1068 = vrot.lane.b32.xlu1 %v1799_v26, %s1619_s29  ;;  %v1351_v26 = vld [vmem:[%s1965_s3 + $0xf] ss:$0 sm:$0xff] }
 0xe96   :  { %v964_v38 = vpop.xlane.xlu0 %963 }
 0xe97   :  { %v968_v13 = vmul.f32 0.03125, %v964_v38 }
 0xe99   :  { %v970_v15 = vadd.f32 1e-12, %v968_v13 }
 0xe9a   :  { %v967_v47 = vpop.xlane.xlu1 %966  ;;  %v997_v4 = vpop.permute.xlu0 %996 }
 0xe9b   :  { %1598 = vrsqrt.f32 %v970_v15  ;;  %v969_v16 = vmul.f32 0.03125, %v967_v47  ;;  %1495 = vmatpush3.bf16.msra.mxu1 %v997_v4 }
 0xe9c   :  { %1496 = vmatprep.subr.bf16.mxu1 %v1616_v14 }
 0xe9d   :  { %v971_v32 = vadd.f32 1e-12, %v969_v16 }
 0xe9e   :  { %v995_v23 = vpop.permute.xlu1 %994  ;;  %v1071_v33 = vpop.permute.xlu0 %1070 }
 0xe9f   :  { %1600 = vrsqrt.f32 %v971_v32  ;;  %1497 = vmatpush3.bf16.msra.mxu1 %v995_v23 }
 0xea0   :  { %1514 = vmatprep.subr.bf16.mxu1 %v1616_v14 }
 0xea2   :  { %v1075_v29 = vpop.permute.xlu1 %1074 }
 0xea3   :  { %1503 = vmatpush3.bf16.msra.mxu0 %v1075_v29 }
 0xea4   :  { %1504 = vmatprep.subr.bf16.mxu0 %v1616_v14 }
 0xea6   :  { %v1073_v30 = vpop.permute.xlu1 %1072 }
 0xea7   :  { %1505 = vmatpush3.bf16.msra.mxu0 %v1073_v30 }
 0xea8   :  { %v1599_v24 = vpop.eup %1598  ;;  %1506 = vmatprep.subr.bf16.mxu0 %v1616_v14 }
 0xea9   :  { %v974_v25 = vmul.f32 %v1599_v24, %v958_v7 }
 0xeaa   :  { %v1069_v34 = vpop.permute.xlu1 %1068 }
 0xeab   :  { %v980_v19 = vmul.f32 %v1351_v26, %v974_v25  ;;  %1507 = vmatpush3.bf16.msra.mxu0 %v1071_v33 }
 0xeac   :  { %v1601_v17 = vpop.eup %1600  ;;  %1508 = vmatprep.subr.bf16.mxu0 %v1616_v14 }
 0xead   :  { %v975_v18 = vmul.f32 %v1601_v17, %v959_v11  ;;  %v986_v22 = vadd.f32 %v1352_v20, %v980_v19  ;;  %v1166_v19 = vlaneseq }
 0xeaf   :  { %v981_v21 = vmul.f32 %v1351_v26, %v975_v18  ;;  %1509 = vmatpush3.bf16.msra.mxu0 %v1069_v34 }
 0xeb1   :  { %v987_v27 = vadd.f32 %v1352_v20, %v981_v21  ;;  %v1169_v20 = vshrl.u32 %v1166_v19, 7 }
 0xeb3   :  { %v988_v28 = vpack.c.bf16 %v987_v27, %v986_v22  ;;  %v1170_v29 = vmul.u32 8, %v1169_v20 }
 0xeb5   :  { %1499 = vmatmul.mubr.msk.bf16.vlgmr.msra.gmra.mxu1 %vm22_vm0, %v988_v28  ;;  %v1167_v28 = vand.u32 127, %v1166_v19 }
 0xeb6   :  { %1516 = vmatprep.mubr.msk.bf16.mxu1 %vm1617_vm1, %v1616_v14 }
 0xeb7   :  { %vm1171_vm4 = vcmp.eq.s32.totalorder %v1167_v28, %v1170_v29 }
 0xf75   :  { %v1037_v36 = vpop.f32.mrf.mxu1 }
 0xf76   :  { %v1038_v39 = vadd.f32 %v1353_v35, %v1037_v36 }
 0xf77   :  { %v1500_v40 = vpop.f32.mrf.mxu1 }
 0xf78   :  { %v1046_v41 = vmul.f32 0.044715, %v1038_v39  ;;  %v1044_v59 = vmul.f32 0.5, %v1038_v39 }
 0xf79   :  { %v1040_v42 = vpop.f32.mrf.mxu1 }
 0xf7a   :  { %v1048_v43 = vmul.f32 %v1046_v41, %v1038_v39  ;;  %v1041_v44 = vadd.f32 %v1353_v35, %v1040_v42  ;;  %v1358_v35 = vld [vmem:[%s1965_s3 + $0x14] ss:$0 sm:$0xff]  ;;  %v1359_v41 = vsel %vm1171_vm4, 1.0, %v1616_v14 }
 0xf7b   :  { %v1501_v45 = vpop.f32.mrf.mxu1 }
 0xf7c   :  { %v1050_v46 = vmul.f32 %v1048_v43, %v1038_v39  ;;  %v1047_v48 = vmul.f32 0.044715, %v1041_v44  ;;  %v1045_v60 = vmul.f32 0.5, %v1041_v44  ;;  %v1174_v43 = vpack.c.bf16 %v1359_v41, %v1359_v41  ;;  %v1549_v45 = vld [vmem:[%s1964_s2 + $0x50] sm:$0xff]  }
 0xf7e   :  { %v1052_v49 = vadd.f32 %v1050_v46, %v1038_v39  ;;  %v1049_v50 = vmul.f32 %v1047_v48, %v1041_v44 }
 0xf80   :  { %v1054_v51 = vmul.f32 0.7978846, %v1052_v49  ;;  %v1051_v52 = vmul.f32 %v1049_v50, %v1041_v44 }
 0xf82   :  { %1602 = vtanh.f32 %v1054_v51  ;;  %v1053_v53 = vadd.f32 %v1051_v52, %v1041_v44  ;;  %v1548_v44 = vld [vmem:[%s1964_s2 + $0x58] sm:$0xff]   ;;  %v1361_v52 = vld [vmem:[%s1965_s3 + $0x2] ss:$0 sm:$0xff] }
 0xf84   :  { %v1055_v55 = vmul.f32 0.7978846, %v1053_v53 }
 0xf86   :  { %1604 = vtanh.f32 %v1055_v55 }
 0xf8f   :  { %v1603_v56 = vpop.eup %1602 }
 0xf90   :  { %v1058_v57 = vadd.f32 1.0, %v1603_v56 }
 0xf92   :  { %v1060_v62 = vmul.f32 %v1058_v57, %v1044_v59 }
 0xf93   :  { %v1605_v58 = vpop.eup %1604 }
 0xf94   :  { %v1059_v61 = vadd.f32 1.0, %v1605_v58  ;;  %v1365_v58 = vld [vmem:[%s1965_s3 + $0x4] ss:$0 sm:$0xff] }
 0xf96   :  { %v1061_v63 = vmul.f32 %v1059_v61, %v1045_v60 }
 0xf98   :  { %v1062_v0 = vpack.c.bf16 %v1061_v63, %v1060_v62  ;;  %v1623_v62 = vmov 0   ;;  %v1366_v63 = vld [vmem:[%s1965_s3 + $0x3] ss:$0 sm:$0xff] }
 0xf99   :  { %1536 = vset.pattern.permute.xlu1 %v1623_v62  ;;  %1537 = vset.pattern.permute.xlu0 %v1623_v62 }
 0xf9a   :  { %1511 = vmatmul.mubr.msk.bf16.vlgmr.msra.gmra.mxu0 %vm544_vm3, %v1062_v0 }
0x105a   :  { %v1117_v2 = vpop.f32.mrf.mxu0 }
0x105b   :  { %v1118_v31 = vadd.f32 %v1355_v1, %v1117_v2 }
0x105c   :  { %v1512_v3 = vpop.f32.mrf.mxu0 }
0x105d   :  { %v1124_v5 = vadd.f32 %v1118_v31, %v986_v22 }
0x105e   :  { %v1120_v6 = vpop.f32.mrf.mxu0 }
0x105f   :  { %v1121_v7 = vadd.f32 %v1355_v1, %v1120_v6  ;;  %v1128_v8 = vsel %vm22_vm0, %v1124_v5, 0.0 }
0x1060   :  { %1129 = vadd.xlane.f32.xlu0 %v1128_v8  ;;  %v1513_v9 = vpop.f32.mrf.mxu0 }
0x1061   :  { %v1125_v10 = vadd.f32 %v1121_v7, %v987_v27  ;;  %v1357_v27 = vld [vmem:[%s1965_s3 + $0x13] ss:$0 sm:$0xff] }
0x1063   :  { %v1131_v11 = vsel %vm22_vm0, %v1125_v10, 0.0 }
0x1064   :  { %1132 = vadd.xlane.f32.xlu1 %v1131_v11 }
0x10e9   :  { %v1130_v54 = vpop.xlane.xlu0 %1129 }
0x10ea   :  { %v1134_v37 = vmul.f32 0.03125, %v1130_v54 }
0x10ec   :  { %v1136_v12 = vsub.f32 %v1124_v5, %v1134_v37 }
0x10ed   :  { %v1133_v38 = vpop.xlane.xlu1 %1132 }
0x10ee   :  { %v1135_v13 = vmul.f32 0.03125, %v1133_v38  ;;  %v1138_v15 = vmul.f32 %v1136_v12, %v1136_v12 }
0x10f0   :  { %v1137_v47 = vsub.f32 %v1125_v10, %v1135_v13  ;;  %v1140_v4 = vsel %vm22_vm0, %v1138_v15, 0.0 }
0x10f1   :  { %1141 = vadd.xlane.f32.xlu0 %v1140_v4 }
0x10f2   :  { %v1139_v16 = vmul.f32 %v1137_v47, %v1137_v47 }
0x10f4   :  { %v1143_v32 = vsel %vm22_vm0, %v1139_v16, 0.0 }
0x10f5   :  { %1144 = vadd.xlane.f32.xlu0 %v1143_v32 }
0x117a   :  { %v1142_v23 = vpop.xlane.xlu0 %1141 }
0x117b   :  { %v1146_v24 = vmul.f32 0.03125, %v1142_v23 }
0x117d   :  { %v1148_v25 = vadd.f32 1e-12, %v1146_v24 }
0x117e   :  { %v1145_v26 = vpop.xlane.xlu0 %1144 }
0x117f   :  { %1606 = vrsqrt.f32 %v1148_v25  ;;  %v1147_v17 = vmul.f32 0.03125, %v1145_v26 }
0x1181   :  { %v1149_v18 = vadd.f32 1e-12, %v1147_v17 }
0x1183   :  { %1608 = vrsqrt.f32 %v1149_v18 }
0x118c   :  { %v1607_v21 = vpop.eup %1606 }
0x118d   :  { %v1152_v22 = vmul.f32 %v1607_v21, %v1136_v12 }
0x118f   :  { %v1158_v34 = vmul.f32 %v1357_v27, %v1152_v22 }
0x1190   :  { %v1609_v30 = vpop.eup %1608 }
0x1191   :  { %v1153_v33 = vmul.f32 %v1609_v30, %v1137_v47  ;;  %v1164_v39 = vadd.f32 %v1358_v35, %v1158_v34 }
0x1193   :  { %v1159_v36 = vmul.f32 %v1357_v27, %v1153_v33 }
0x1195   :  { %v1165_v40 = vadd.f32 %v1358_v35, %v1159_v36 }
0x1197   :  { %v1175_v42 = vpack.c.bf16 %v1165_v40, %v1164_v39 }
0x1199   :  { %1515 = vmatpush3.bf16.msra.mxu1 %v1175_v42 }
0x119a   :  { %1520 = vmatprep.subr.bf16.mxu1 %v1616_v14 }
0x119c   :  { %1517 = vmatmul.mubr.msk.bf16.vlgmr.msra.gmra.mxu1 %vm134_vm2, %v1174_v43 }
0x119d   :  { %1521 = vmatpush3.bf16.msra.mxu1 %v1548_v44  ;;  %1524 = vmatprep.mubr.msk.bf16.mxu1 %vm1617_vm1, %v1616_v14 }
0x119e   :  { %1522 = vmatprep.subr.bf16.mxu1 %v1616_v14 }
0x11a1   :  { %1523 = vmatpush3.bf16.msra.mxu1 %v1549_v45 }
0x125c   :  { %v1213_v46 = vpop.f32.mrf.mxu1 }
0x125d   :  { %v1223_v48 = vpack.c.bf16 %v1213_v46, %v1213_v46 }
0x125e   :  { %v1518_v49 = vpop.f32.mrf.mxu1 }
0x125f   :  { %1525 = vmatmul.mubr.msk.bf16.vlgmr.msra.gmra.mxu1 %vm22_vm0, %v1223_v48 }
0x1260   :  { %v1216_v50 = vpop.f32.mrf.mxu1 }
0x1262   :  { %v1519_v51 = vpop.f32.mrf.mxu1 }
0x131f   :  { %v1278_v53 = vpop.f32.mrf.mxu1 }
0x1320   :  { %v1279_v55 = vadd.f32 %v1361_v52, %v1278_v53 }
0x1321   :  { %v1526_v56 = vpop.f32.mrf.mxu1 }
0x1322   :  { %1610 = vtanh.f32 %v1279_v55 }
0x1323   :  { %v1281_v14 = vpop.f32.mrf.mxu1 }
0x1325   :  { %v1527_v57 = vpop.f32.mrf.mxu1 }
0x132f   :  { %v1611_v59 = vpop.eup %1610 }
0x1330   :  { %v1290_v60 = vmul.f32 %v1611_v59, %v1365_v58 }
0x1332   :  { %v1292_v61 = vsel %vm1291_vm5, %v1290_v60, 0.0 }
0x1333   :  { %1293 = vadd.xlane.f32.xlu0 %v1292_v61 }
0x13bc   :  { %v1294_v0 = vpop.xlane.xlu0 %1293 }
0x13bd   :  { %v1300_v1 = vadd.f32 %v1366_v63, %v1294_v0 }
0x13bf   :  { %v1301_v2 = vsub.f32 0.0, %v1300_v1 }
0x13c1   :  { %v1302_v31 = vmul.f32 1.442695, %v1301_v2 }
0x13c3   :  { %1612 = vpow2.f32 %v1302_v31 }
0x13d0   :  { %v1613_v3 = vpop.eup %1612 }
0x13d1   :  { %v1304_v5 = vadd.f32 1.0, %v1613_v3 }
0x13d3   :  { %1614 = vrcp.f32 %v1304_v5 }
0x13e0   :  { %v1615_v6 = vpop.eup %1614 }
0x13e1   :  { %1309 = vperm.xlu1 %1536, %v1615_v6  }
0x145c   :  { %v1310_v7 = vpop.permute.xlu1 %1309 }
0x145d   :  { %1312 = vst [vmem:[%s1967_s4] sm:$0x3] %v1310_v7 }

</bundles_post_ra>
